<compile_context>
chip_gen: v7x
topology: tpu7x:2x2x1
jax: 0.10.0
libtpu: 0.0.40
codegen_flags: <defaults>
</compile_context>

<pallas_src>
import math

import jax
import jax.numpy as jnp
from jax import lax
from jax.experimental import pallas as pl
from jax.experimental.pallas import tpu as pltpu


def _round_up(x, m=128):
    return ((x + m - 1) // m) * m


# ----------------------------------------------------------------------------
# Fused forward kernel.  Grid = (batch_tiles, 3 heads).
# Ref order: inputs..., outputs..., scratch...
# ----------------------------------------------------------------------------
def _make_fused_kernel(*, tm, n_enc, n_dec, ip, n_clusters, sigma, alpha):
    sigma = float(sigma)
    inv_alpha = 1.0 / float(alpha)
    exponent = (float(alpha) + 1.0) / 2.0

    def kernel(*refs):
        idx = 0
        x_ref = refs[idx]; idx += 1                       # (tm, IP) f32
        noise_ref = refs[idx]; idx += 1                   # (tm, IP) f32
        enc = [(refs[idx + 2 * i], refs[idx + 2 * i + 1]) for i in range(n_enc)]
        idx += 2 * n_enc
        encmu_w, encmu_b = refs[idx], refs[idx + 1]; idx += 2
        dec = [(refs[idx + 2 * i], refs[idx + 2 * i + 1]) for i in range(n_dec)]
        idx += 2 * n_dec
        head_w, head_b = refs[idx], refs[idx + 1]; idx += 2   # (hid, IP) bf16 / (1, IP) f32 tile
        mu_t_ref, mu_sq_ref = refs[idx], refs[idx + 1]; idx += 2
        z0_ref, q_ref, heads_ref = refs[idx], refs[idx + 1], refs[idx + 2]; idx += 3
        x2_ref = refs[idx]; idx += 1                      # (2*tm, IP) bf16 scratch
        hd_ref = refs[idx]                                # (tm, dec_last) bf16 scratch

        h_id = pl.program_id(1)

        # ---- encoder / decoder / soft-assign: once per batch tile -----------
        @pl.when(h_id == 0)
        def _():
            x = x_ref[...]
            # noisy half (forward branch) and clean half (z0 branch), stacked
            x2_ref[:tm] = (x + noise_ref[...] * sigma).astype(jnp.bfloat16)
            x2_ref[tm:] = x.astype(jnp.bfloat16)

            h = x2_ref[...]                               # (2*tm, IP) bf16
            for w_ref, b_ref in enc:                      # Linear + ReLU
                a = jnp.dot(h, w_ref[...], preferred_element_type=jnp.float32)
                h = jnp.maximum(a + b_ref[...], 0.0).astype(jnp.bfloat16)
            z_both = jnp.dot(h, encmu_w[...], preferred_element_type=jnp.float32)
            z_both = z_both + encmu_b[...]                # _enc_mu (no activation)
            z = z_both[:tm]                               # noisy embedding (f32)
            z0 = z_both[tm:]                              # clean embedding (f32)

            hd = z.astype(jnp.bfloat16)                   # decoder on noisy branch
            for w_ref, b_ref in dec:
                a = jnp.dot(hd, w_ref[...], preferred_element_type=jnp.float32)
                hd = jnp.maximum(a + b_ref[...], 0.0).astype(jnp.bfloat16)
            hd_ref[...] = hd                              # carried across head axis

            # Student-t soft assignment on the clean embedding (all f32)
            mu_t = mu_t_ref[...]                          # (ZP, KP), pre-transposed
            z0_sq = jnp.sum(z0 * z0, axis=1, keepdims=True)          # (tm, 1)
            cross = jnp.dot(z0, mu_t, preferred_element_type=jnp.float32)  # (tm, KP)
            d2 = jnp.maximum(z0_sq + mu_sq_ref[...] - 2.0 * cross, 0.0)
            if exponent == 1.0:          # alpha == 1: pow is a no-op
                q = pl.reciprocal(1.0 + d2, approx=False)
            else:
                q = (1.0 + d2 * inv_alpha) ** (-exponent)
            # zero padded cluster columns before row-normalization
            col = lax.broadcasted_iota(jnp.int32, q.shape, 1)
            q = jnp.where(col < n_clusters, q, 0.0)
            q = q * pl.reciprocal(jnp.sum(q, axis=1, keepdims=True), approx=False)

            z0_ref[...] = z0.astype(z0_ref.dtype)
            q_ref[...] = q.astype(q_ref.dtype)

        # ---- ZINB head tile: one MXU matmul + per-head f32 epilogue ---------
        y = jnp.dot(hd_ref[...], head_w[...], preferred_element_type=jnp.float32)
        y = y + head_b[...]

        @pl.when(h_id == 0)   # MeanAct: clamp(exp(x), 1e-5, 1e6)
        def _():
            heads_ref[...] = jnp.clip(jnp.exp(y), 1e-5, 1e6).astype(heads_ref.dtype)

        @pl.when(h_id == 1)   # DispAct: clamp(softplus(x), 1e-4, 1e4)
        def _():
            sp = jnp.where(y > 20.0, y,
                           jnp.log(1.0 + jnp.exp(jnp.minimum(y, 20.0))))
            heads_ref[...] = jnp.clip(sp, 1e-4, 1e4).astype(heads_ref.dtype)

        @pl.when(h_id == 2)   # Sigmoid
        def _():
            pi = pl.reciprocal(1.0 + jnp.exp(-y), approx=False)
            heads_ref[...] = pi.astype(heads_ref.dtype)

    return kernel


# ----------------------------------------------------------------------------
# Parameter construction (mirrors nn.Linear init), padded to 128-lane
# multiples; matmul weights in bf16, biases in f32; heads fused; mu transposed.
# ----------------------------------------------------------------------------
def _init_linear(key, d_in, d_out):
    kw, kb = jax.random.split(key)
    bound = 1.0 / math.sqrt(d_in)
    w = jax.random.uniform(kw, (d_in, d_out), jnp.float32, -bound, bound)
    b = jax.random.uniform(kb, (1, d_out), jnp.float32, -bound, bound)
    return w, b


def _pad(arr, shape):
    out = jnp.zeros(shape, arr.dtype)
    return out.at[tuple(slice(0, s) for s in arr.shape)].set(arr)


def init_scdeepcluster_params(key, input_dim, z_dim, encode_layers,
                              decode_layers, n_clusters):
    n_keys = len(encode_layers) + len(decode_layers) + 5
    keys = iter(jax.random.split(key, n_keys))

    ip = _round_up(input_dim)
    zp = _round_up(z_dim)
    kp = _round_up(n_clusters)
    enc_pads = [_round_up(d) for d in encode_layers]
    dec_pads = [_round_up(d) for d in decode_layers]

    params = {"dims": dict(input_dim=input_dim, z_dim=z_dim,
                           n_clusters=n_clusters, ip=ip, zp=zp, kp=kp,
                           dec_last_pad=dec_pads[-1])}

    # encoder: [input_dim] + encode_layers, Linear + ReLU each
    enc, prev, prev_pad = [], input_dim, ip
    for d, dp in zip(encode_layers, enc_pads):
        w, b = _init_linear(next(keys), prev, d)
        enc.append((_pad(w, (prev_pad, dp)).astype(jnp.bfloat16), _pad(b, (1, dp))))
        prev, prev_pad = d, dp
    params["encoder"] = enc

    w, b = _init_linear(next(keys), encode_layers[-1], z_dim)
    params["enc_mu"] = (_pad(w, (enc_pads[-1], zp)).astype(jnp.bfloat16),
                        _pad(b, (1, zp)))

    # decoder: [z_dim] + decode_layers, Linear + ReLU each
    dec, prev, prev_pad = [], z_dim, zp
    for d, dp in zip(decode_layers, dec_pads):
        w, b = _init_linear(next(keys), prev, d)
        dec.append((_pad(w, (prev_pad, dp)).astype(jnp.bfloat16), _pad(b, (1, dp))))
        prev, prev_pad = d, dp
    params["decoder"] = dec

    # fused ZINB heads: [mean | disp | pi] on 128-aligned lane slices
    d_hid, d_hid_pad = decode_layers[-1], dec_pads[-1]
    head_w = jnp.zeros((d_hid_pad, 3 * ip), jnp.float32)
    head_b = jnp.zeros((1, 3 * ip), jnp.float32)
    for slot in range(3):
        w, b = _init_linear(next(keys), d_hid, input_dim)
        head_w = head_w.at[:d_hid, slot * ip:slot * ip + input_dim].set(w)
        head_b = head_b.at[:, slot * ip:slot * ip + input_dim].set(b)
    params["head"] = (head_w.astype(jnp.bfloat16), head_b)

    # cluster centers mu (n_clusters, z_dim), stored pre-transposed (ZP, KP)
    mu = jax.random.normal(next(keys), (n_clusters, z_dim), jnp.float32)
    params["mu_t"] = _pad(mu.T, (zp, kp))
    return params


# ----------------------------------------------------------------------------
# Forward pass (== ScDeepCluster.forward) — single fused, gridded pallas_call
# ----------------------------------------------------------------------------
def scdeepcluster_forward(params, x, noise, sigma=1.0, alpha=1.0):
    dims = params["dims"]
    input_dim, z_dim, n_clusters = dims["input_dim"], dims["z_dim"], dims["n_clusters"]
    ip, zp, kp = dims["ip"], dims["zp"], dims["kp"]
    dec_last_pad = dims["dec_last_pad"]

    n = x.shape[0]
    # Batch tile: multiple of 16 sublanes (bf16 packing); aim for MXU height
    # (256 rows) once the batch is large enough to grid.
    tm = min(256, _round_up(n, 16))
    n_pad = _round_up(n, tm)
    n_tiles = n_pad // tm

    xp = jnp.zeros((n_pad, ip), jnp.float32).at[:n, :input_dim].set(x)
    noisep = jnp.zeros((n_pad, ip), jnp.float32).at[:n, :input_dim].set(noise)

    mu_t = params["mu_t"]                                       # (ZP, KP)
    mu_sq = jnp.sum(mu_t * mu_t, axis=0, keepdims=True)         # (1, KP), padded cols = 0

    enc, dec = params["encoder"], params["decoder"]
    head_w, head_b = params["head"]

    flat_inputs = [xp, noisep]
    for w, b in enc:
        flat_inputs += [w, b]
    flat_inputs += list(params["enc_mu"])
    for w, b in dec:
        flat_inputs += [w, b]
    flat_inputs += [head_w, head_b, mu_t, mu_sq]

    kernel = _make_fused_kernel(tm=tm, n_enc=len(enc), n_dec=len(dec), ip=ip,
                                n_clusters=n_clusters, sigma=float(sigma),
                                alpha=float(alpha))

    # ---- block specs ---------------------------------------------------------
    in_specs = [pl.BlockSpec((tm, ip), lambda b, h: (b, 0)),       # x
                pl.BlockSpec((tm, ip), lambda b, h: (b, 0))]       # noise
    # encoder / enc_mu / decoder weights + biases: resident full blocks
    n_resident = 2 * len(enc) + 2 + 2 * len(dec)
    for a in flat_inputs[2:2 + n_resident]:
        in_specs.append(pl.BlockSpec(a.shape, lambda b, h: (0, 0)))
    # fused head weight / bias: one 128-aligned head slice per grid step
    in_specs.append(pl.BlockSpec((dec_last_pad, ip), lambda b, h: (0, h)))
    in_specs.append(pl.BlockSpec((1, ip), lambda b, h: (0, h)))
    # mu (transposed) and ||mu||^2: resident
    in_specs.append(pl.BlockSpec(mu_t.shape, lambda b, h: (0, 0)))
    in_specs.append(pl.BlockSpec(mu_sq.shape, lambda b, h: (0, 0)))

    out_shapes = (
        jax.ShapeDtypeStruct((n_pad, zp), jnp.float32),            # z0 (padded)
        jax.ShapeDtypeStruct((n_pad, kp), jnp.float32),            # q  (padded)
        jax.ShapeDtypeStruct((n_pad, 3 * ip), jnp.float32),        # [mean|disp|pi]
    )
    out_specs = (
        pl.BlockSpec((tm, zp), lambda b, h: (b, 0)),   # resident across head axis
        pl.BlockSpec((tm, kp), lambda b, h: (b, 0)),   # resident across head axis
        pl.BlockSpec((tm, ip), lambda b, h: (b, h)),   # lane-dense per-head tile
    )

    scratch_shapes = [pltpu.VMEM((2 * tm, ip), jnp.bfloat16),          # stacked input
                      pltpu.VMEM((tm, dec_last_pad), jnp.bfloat16)]    # decoder hidden

    # ---- shape-derived VMEM limit --------------------------------------------
    def _nbytes(a):
        return int(a.size) * a.dtype.itemsize

    weight_bytes = sum(_nbytes(a) for a in flat_inputs[2:])
    io_tile_bytes = 2 * (2 * tm * ip * 4) + 2 * (tm * (zp + kp + ip) * 4)
    scratch_bytes = (2 * tm * ip + tm * dec_last_pad) * 2
    est = 2 * weight_bytes + io_tile_bytes + scratch_bytes
    try:
        cap = int(pltpu.get_tpu_info().vmem_capacity_bytes * 0.8)
    except Exception:
        cap = 100 * 1024 * 1024
    vmem_limit = int(min(cap, max(32 * 1024 * 1024, 2 * est)))

    z0_p, q_p, heads = pl.pallas_call(
        kernel,
        out_shape=out_shapes,
        grid=(n_tiles, 3),
        in_specs=in_specs,
        out_specs=out_specs,
        scratch_shapes=scratch_shapes,
        compiler_params=pltpu.CompilerParams(
            dimension_semantics=("parallel", "arbitrary"),
            vmem_limit_bytes=vmem_limit),
    )(*flat_inputs)

    # slice the real (unpadded) results outside the kernel
    z0 = z0_p[:n, :z_dim]
    q = q_p[:n, :n_clusters]
    _mean = heads[:n, 0:input_dim]
    _disp = heads[:n, ip:ip + input_dim]
    _pi = heads[:n, 2 * ip:2 * ip + input_dim]
    return z0, q, _mean, _disp, _pi


if __name__ == "__main__":
    # Small shapes consistent with the module's dense autoencoder.
    batch = 8
    input_dim = 32
    encode_layers = [64, 32]
    decode_layers = [32, 64]
    z_dim = 8
    n_clusters = 4
    sigma = 1.0
    alpha = 1.0

    key = jax.random.PRNGKey(0)
    k_param, k_x, k_noise = jax.random.split(key, 3)

    params = init_scdeepcluster_params(
        k_param, input_dim, z_dim, encode_layers, decode_layers, n_clusters)
    x = jax.random.normal(k_x, (batch, input_dim), jnp.float32)
    # deterministic stand-in for torch.randn_like(x) in forward()
    noise = jax.random.normal(k_noise, (batch, input_dim), jnp.float32)

    z0, q, _mean, _disp, _pi = scdeepcluster_forward(
        params, x, noise, sigma=sigma, alpha=alpha)
    jax.block_until_ready((z0, q, _mean, _disp, _pi))

    assert z0.shape == (batch, z_dim)
    assert q.shape == (batch, n_clusters)
    assert _mean.shape == (batch, input_dim)
    assert _disp.shape == (batch, input_dim)
    assert _pi.shape == (batch, input_dim)
    assert bool(jnp.allclose(jnp.sum(q, axis=1), 1.0, atol=1e-5))
    assert bool(jnp.all(jnp.isfinite(z0)))
    assert bool(jnp.all(jnp.isfinite(_mean))) and bool(jnp.all(_mean >= 1e-5))
    assert bool(jnp.all(jnp.isfinite(_disp))) and bool(jnp.all(_disp >= 1e-4))
    assert bool(jnp.all((_pi >= 0.0) & (_pi <= 1.0)))

    print("KERNEL_OK")
</pallas_src>

<mosaic_0001>
module attributes {stable_mosaic.version = 11 : i64} {
  func.func @kernel(%arg0: i32, %arg1: i32, %arg2: memref<16x128xf32, #tpu.memory_space<vmem>>, %arg3: memref<16x128xf32, #tpu.memory_space<vmem>>, %arg4: memref<128x128xbf16, #tpu.memory_space<vmem>>, %arg5: memref<1x128xf32, #tpu.memory_space<vmem>>, %arg6: memref<128x128xbf16, #tpu.memory_space<vmem>>, %arg7: memref<1x128xf32, #tpu.memory_space<vmem>>, %arg8: memref<128x128xbf16, #tpu.memory_space<vmem>>, %arg9: memref<1x128xf32, #tpu.memory_space<vmem>>, %arg10: memref<128x128xbf16, #tpu.memory_space<vmem>>, %arg11: memref<1x128xf32, #tpu.memory_space<vmem>>, %arg12: memref<128x128xbf16, #tpu.memory_space<vmem>>, %arg13: memref<1x128xf32, #tpu.memory_space<vmem>>, %arg14: memref<128x128xbf16, #tpu.memory_space<vmem>>, %arg15: memref<1x128xf32, #tpu.memory_space<vmem>>, %arg16: memref<128x128xf32, #tpu.memory_space<vmem>>, %arg17: memref<1x128xf32, #tpu.memory_space<vmem>>, %arg18: memref<16x128xf32, #tpu.memory_space<vmem>>, %arg19: memref<16x128xf32, #tpu.memory_space<vmem>>, %arg20: memref<16x128xf32, #tpu.memory_space<vmem>>, %arg21: memref<32x128xbf16, #tpu.memory_space<vmem>>, %arg22: memref<16x128xbf16, #tpu.memory_space<vmem>>) attributes {dimension_semantics = [#tpu.dimension_semantics<parallel>, #tpu.dimension_semantics<arbitrary>], iteration_bounds = array<i64: 1, 3>, scalar_prefetch = 0 : i64, scratch_operands = 2 : i64, tpu.core_type = #tpu.core_type<tc>, window_params = [{transform_indices = @transform_0, window_bounds = array<i64: 16, 128>}, {transform_indices = @transform_1, window_bounds = array<i64: 16, 128>}, {pipeline_mode = #tpu.pipeline_mode<synchronous>, transform_indices = @transform_2, window_bounds = array<i64: 128, 128>}, {pipeline_mode = #tpu.pipeline_mode<synchronous>, transform_indices = @transform_3, window_bounds = array<i64: 1, 128>}, {pipeline_mode = #tpu.pipeline_mode<synchronous>, transform_indices = @transform_4, window_bounds = array<i64: 128, 128>}, {pipeline_mode = #tpu.pipeline_mode<synchronous>, transform_indices = @transform_5, window_bounds = array<i64: 1, 128>}, {pipeline_mode = #tpu.pipeline_mode<synchronous>, transform_indices = @transform_6, window_bounds = array<i64: 128, 128>}, {pipeline_mode = #tpu.pipeline_mode<synchronous>, transform_indices = @transform_7, window_bounds = array<i64: 1, 128>}, {pipeline_mode = #tpu.pipeline_mode<synchronous>, transform_indices = @transform_8, window_bounds = array<i64: 128, 128>}, {pipeline_mode = #tpu.pipeline_mode<synchronous>, transform_indices = @transform_9, window_bounds = array<i64: 1, 128>}, {pipeline_mode = #tpu.pipeline_mode<synchronous>, transform_indices = @transform_10, window_bounds = array<i64: 128, 128>}, {pipeline_mode = #tpu.pipeline_mode<synchronous>, transform_indices = @transform_11, window_bounds = array<i64: 1, 128>}, {transform_indices = @transform_12, window_bounds = array<i64: 128, 128>}, {transform_indices = @transform_13, window_bounds = array<i64: 1, 128>}, {pipeline_mode = #tpu.pipeline_mode<synchronous>, transform_indices = @transform_14, window_bounds = array<i64: 128, 128>}, {pipeline_mode = #tpu.pipeline_mode<synchronous>, transform_indices = @transform_15, window_bounds = array<i64: 1, 128>}, {transform_indices = @transform_16, window_bounds = array<i64: 16, 128>}, {transform_indices = @transform_17, window_bounds = array<i64: 16, 128>}, {transform_indices = @transform_18, window_bounds = array<i64: 16, 128>}]} {
    %c0_i32 = arith.constant 0 : i32
    %0 = arith.cmpi eq, %arg1, %c0_i32 : i32
    %1 = arith.extui %0 : i1 to i32
    %c0_i32_0 = arith.constant 0 : i32
    %2 = arith.cmpi ne, %1, %c0_i32_0 : i32
    scf.if %2 {
      %c0_10 = arith.constant 0 : index
      %c0_11 = arith.constant 0 : index
      %18 = vector.load %arg2[%c0_10, %c0_11] : memref<16x128xf32, #tpu.memory_space<vmem>>, vector<16x128xf32>
      %c0_12 = arith.constant 0 : index
      %c0_13 = arith.constant 0 : index
      %19 = vector.load %arg3[%c0_12, %c0_13] : memref<16x128xf32, #tpu.memory_space<vmem>>, vector<16x128xf32>
      %cst_14 = arith.constant 1.000000e+00 : f32
      %20 = vector.broadcast %cst_14 : f32 to vector<16x128xf32>
      %21 = arith.mulf %19, %20 : vector<16x128xf32>
      %22 = arith.addf %18, %21 : vector<16x128xf32>
      %23 = arith.truncf %22 : vector<16x128xf32> to vector<16x128xbf16>
      %c0_15 = arith.constant 0 : index
      %c0_16 = arith.constant 0 : index
      %24 = vector.load %arg21[%c0_15, %c0_16] : memref<32x128xbf16, #tpu.memory_space<vmem>>, vector<16x128xbf16>
      tpu.vector_store %arg21[%c0_15, %c0_16], %23 {strides = array<i32>} : memref<32x128xbf16, #tpu.memory_space<vmem>>, vector<16x128xbf16>,
      %25 = arith.truncf %18 : vector<16x128xf32> to vector<16x128xbf16>
      %c16 = arith.constant 16 : index
      %c0_17 = arith.constant 0 : index
      %26 = vector.load %arg21[%c16, %c0_17] : memref<32x128xbf16, #tpu.memory_space<vmem>>, vector<16x128xbf16>
      tpu.vector_store %arg21[%c16, %c0_17], %25 {strides = array<i32>} : memref<32x128xbf16, #tpu.memory_space<vmem>>, vector<16x128xbf16>,
      %c0_18 = arith.constant 0 : index
      %c0_19 = arith.constant 0 : index
      %27 = vector.load %arg21[%c0_18, %c0_19] : memref<32x128xbf16, #tpu.memory_space<vmem>>, vector<32x128xbf16>
      %c0_20 = arith.constant 0 : index
      %c0_21 = arith.constant 0 : index
      %28 = vector.load %arg4[%c0_20, %c0_21] : memref<128x128xbf16, #tpu.memory_space<vmem>>, vector<128x128xbf16>
      %cst_22 = arith.constant dense<0.000000e+00> : vector<32x128xf32>
      %29 = tpu.matmul %27, %28, %cst_22 {dimension_numbers = #tpu.dot_dimension_numbers<[1], [0], [0], [1], [0, 0, 1, 1], [], []>} : vector<32x128xbf16>, vector<128x128xbf16>, vector<32x128xf32> -> vector<32x128xf32>
      %c0_23 = arith.constant 0 : index
      %c0_24 = arith.constant 0 : index
      %30 = vector.load %arg5[%c0_23, %c0_24] : memref<1x128xf32, #tpu.memory_space<vmem>>, vector<1x128xf32>
      %31 = vector.broadcast %30 : vector<1x128xf32> to vector<32x128xf32>
      %32 = arith.addf %29, %31 : vector<32x128xf32>
      %cst_25 = arith.constant 0.000000e+00 : f32
      %33 = vector.broadcast %cst_25 : f32 to vector<32x128xf32>
      %34 = arith.maximumf %32, %33 : vector<32x128xf32>
      %35 = arith.truncf %34 : vector<32x128xf32> to vector<32x128xbf16>
      %c0_26 = arith.constant 0 : index
      %c0_27 = arith.constant 0 : index
      %36 = vector.load %arg6[%c0_26, %c0_27] : memref<128x128xbf16, #tpu.memory_space<vmem>>, vector<128x128xbf16>
      %cst_28 = arith.constant dense<0.000000e+00> : vector<32x128xf32>
      %37 = tpu.matmul %35, %36, %cst_28 {dimension_numbers = #tpu.dot_dimension_numbers<[1], [0], [0], [1], [0, 0, 1, 1], [], []>} : vector<32x128xbf16>, vector<128x128xbf16>, vector<32x128xf32> -> vector<32x128xf32>
      %c0_29 = arith.constant 0 : index
      %c0_30 = arith.constant 0 : index
      %38 = vector.load %arg7[%c0_29, %c0_30] : memref<1x128xf32, #tpu.memory_space<vmem>>, vector<1x128xf32>
      %39 = vector.broadcast %38 : vector<1x128xf32> to vector<32x128xf32>
      %40 = arith.addf %37, %39 : vector<32x128xf32>
      %cst_31 = arith.constant 0.000000e+00 : f32
      %41 = vector.broadcast %cst_31 : f32 to vector<32x128xf32>
      %42 = arith.maximumf %40, %41 : vector<32x128xf32>
      %43 = arith.truncf %42 : vector<32x128xf32> to vector<32x128xbf16>
      %c0_32 = arith.constant 0 : index
      %c0_33 = arith.constant 0 : index
      %44 = vector.load %arg8[%c0_32, %c0_33] : memref<128x128xbf16, #tpu.memory_space<vmem>>, vector<128x128xbf16>
      %cst_34 = arith.constant dense<0.000000e+00> : vector<32x128xf32>
      %45 = tpu.matmul %43, %44, %cst_34 {dimension_numbers = #tpu.dot_dimension_numbers<[1], [0], [0], [1], [0, 0, 1, 1], [], []>} : vector<32x128xbf16>, vector<128x128xbf16>, vector<32x128xf32> -> vector<32x128xf32>
      %c0_35 = arith.constant 0 : index
      %c0_36 = arith.constant 0 : index
      %46 = vector.load %arg9[%c0_35, %c0_36] : memref<1x128xf32, #tpu.memory_space<vmem>>, vector<1x128xf32>
      %47 = vector.broadcast %46 : vector<1x128xf32> to vector<32x128xf32>
      %48 = arith.addf %45, %47 : vector<32x128xf32>
      %49 = vector.extract_strided_slice %48 {offsets = [0, 0], sizes = [16, 128], strides = [1, 1]} : vector<32x128xf32> to vector<16x128xf32>
      %50 = vector.extract_strided_slice %48 {offsets = [16, 0], sizes = [16, 128], strides = [1, 1]} : vector<32x128xf32> to vector<16x128xf32>
      %51 = arith.truncf %49 : vector<16x128xf32> to vector<16x128xbf16>
      %c0_37 = arith.constant 0 : index
      %c0_38 = arith.constant 0 : index
      %52 = vector.load %arg10[%c0_37, %c0_38] : memref<128x128xbf16, #tpu.memory_space<vmem>>, vector<128x128xbf16>
      %cst_39 = arith.constant dense<0.000000e+00> : vector<16x128xf32>
      %53 = tpu.matmul %51, %52, %cst_39 {dimension_numbers = #tpu.dot_dimension_numbers<[1], [0], [0], [1], [0, 0, 1, 1], [], []>} : vector<16x128xbf16>, vector<128x128xbf16>, vector<16x128xf32> -> vector<16x128xf32>
      %c0_40 = arith.constant 0 : index
      %c0_41 = arith.constant 0 : index
      %54 = vector.load %arg11[%c0_40, %c0_41] : memref<1x128xf32, #tpu.memory_space<vmem>>, vector<1x128xf32>
      %55 = vector.broadcast %54 : vector<1x128xf32> to vector<16x128xf32>
      %56 = arith.addf %53, %55 : vector<16x128xf32>
      %cst_42 = arith.constant 0.000000e+00 : f32
      %57 = vector.broadcast %cst_42 : f32 to vector<16x128xf32>
      %58 = arith.maximumf %56, %57 : vector<16x128xf32>
      %59 = arith.truncf %58 : vector<16x128xf32> to vector<16x128xbf16>
      %c0_43 = arith.constant 0 : index
      %c0_44 = arith.constant 0 : index
      %60 = vector.load %arg12[%c0_43, %c0_44] : memref<128x128xbf16, #tpu.memory_space<vmem>>, vector<128x128xbf16>
      %cst_45 = arith.constant dense<0.000000e+00> : vector<16x128xf32>
      %61 = tpu.matmul %59, %60, %cst_45 {dimension_numbers = #tpu.dot_dimension_numbers<[1], [0], [0], [1], [0, 0, 1, 1], [], []>} : vector<16x128xbf16>, vector<128x128xbf16>, vector<16x128xf32> -> vector<16x128xf32>
      %c0_46 = arith.constant 0 : index
      %c0_47 = arith.constant 0 : index
      %62 = vector.load %arg13[%c0_46, %c0_47] : memref<1x128xf32, #tpu.memory_space<vmem>>, vector<1x128xf32>
      %63 = vector.broadcast %62 : vector<1x128xf32> to vector<16x128xf32>
      %64 = arith.addf %61, %63 : vector<16x128xf32>
      %cst_48 = arith.constant 0.000000e+00 : f32
      %65 = vector.broadcast %cst_48 : f32 to vector<16x128xf32>
      %66 = arith.maximumf %64, %65 : vector<16x128xf32>
      %67 = arith.truncf %66 : vector<16x128xf32> to vector<16x128xbf16>
      %c0_49 = arith.constant 0 : index
      %c0_50 = arith.constant 0 : index
      %68 = vector.load %arg22[%c0_49, %c0_50] : memref<16x128xbf16, #tpu.memory_space<vmem>>, vector<16x128xbf16>
      tpu.vector_store %arg22[%c0_49, %c0_50], %67 {strides = array<i32>} : memref<16x128xbf16, #tpu.memory_space<vmem>>, vector<16x128xbf16>,
      %c0_51 = arith.constant 0 : index
      %c0_52 = arith.constant 0 : index
      %69 = vector.load %arg16[%c0_51, %c0_52] : memref<128x128xf32, #tpu.memory_space<vmem>>, vector<128x128xf32>
      %70 = arith.mulf %50, %50 : vector<16x128xf32>
      %cst_53 = arith.constant dense<0.000000e+00> : vector<16xf32>
      %71 = vector.multi_reduction <add>, %70, %cst_53 [1] : vector<16x128xf32> to vector<16xf32>
      %72 = vector.shape_cast %71 : vector<16xf32> to vector<16x1xf32>
      %cst_54 = arith.constant dense<0.000000e+00> : vector<16x128xf32>
      %73 = tpu.matmul %50, %69, %cst_54 {dimension_numbers = #tpu.dot_dimension_numbers<[1], [0], [0], [1], [0, 0, 1, 1], [], []>} : vector<16x128xf32>, vector<128x128xf32>, vector<16x128xf32> -> vector<16x128xf32>
      %c0_55 = arith.constant 0 : index
      %c0_56 = arith.constant 0 : index
      %74 = vector.load %arg17[%c0_55, %c0_56] : memref<1x128xf32, #tpu.memory_space<vmem>>, vector<1x128xf32>
      %75 = vector.broadcast %72 : vector<16x1xf32> to vector<16x128xf32>
      %76 = vector.broadcast %74 : vector<1x128xf32> to vector<16x128xf32>
      %77 = arith.addf %75, %76 : vector<16x128xf32>
      %cst_57 = arith.constant 2.000000e+00 : f32
      %78 = vector.broadcast %cst_57 : f32 to vector<16x128xf32>
      %79 = arith.mulf %78, %73 : vector<16x128xf32>
      %80 = arith.subf %77, %79 : vector<16x128xf32>
      %cst_58 = arith.constant 0.000000e+00 : f32
      %81 = vector.broadcast %cst_58 : f32 to vector<16x128xf32>
      %82 = arith.maximumf %80, %81 : vector<16x128xf32>
      %cst_59 = arith.constant 1.000000e+00 : f32
      %83 = vector.broadcast %cst_59 : f32 to vector<16x128xf32>
      %84 = arith.addf %83, %82 : vector<16x128xf32>
      %85 = tpu.reciprocal %84 : vector<16x128xf32> -> vector<16x128xf32>
      %86 = tpu.iota {dimensions = array<i32: 1>} : vector<16x128xi32>
      %c4_i32 = arith.constant 4 : i32
      %87 = vector.broadcast %c4_i32 : i32 to vector<16x128xi32>
      %88 = arith.cmpi slt, %86, %87 : vector<16x128xi32>
      %cst_60 = arith.constant 0.000000e+00 : f32
      %89 = vector.broadcast %cst_60 : f32 to vector<16x128xf32>
      %90 = arith.select %88, %85, %89 : vector<16x128xi1>, vector<16x128xf32>
      %cst_61 = arith.constant dense<0.000000e+00> : vector<16xf32>
      %91 = vector.multi_reduction <add>, %90, %cst_61 [1] : vector<16x128xf32> to vector<16xf32>
      %92 = vector.shape_cast %91 : vector<16xf32> to vector<16x1xf32>
      %93 = tpu.reciprocal %92 : vector<16x1xf32> -> vector<16x1xf32>
      %94 = vector.broadcast %93 : vector<16x1xf32> to vector<16x128xf32>
      %95 = arith.mulf %90, %94 : vector<16x128xf32>
      %c0_62 = arith.constant 0 : index
      %c0_63 = arith.constant 0 : index
      %96 = vector.load %arg18[%c0_62, %c0_63] : memref<16x128xf32, #tpu.memory_space<vmem>>, vector<16x128xf32>
      tpu.vector_store %arg18[%c0_62, %c0_63], %50 {strides = array<i32>} : memref<16x128xf32, #tpu.memory_space<vmem>>, vector<16x128xf32>,
      %c0_64 = arith.constant 0 : index
      %c0_65 = arith.constant 0 : index
      %97 = vector.load %arg19[%c0_64, %c0_65] : memref<16x128xf32, #tpu.memory_space<vmem>>, vector<16x128xf32>
      tpu.vector_store %arg19[%c0_64, %c0_65], %95 {strides = array<i32>} : memref<16x128xf32, #tpu.memory_space<vmem>>, vector<16x128xf32>,
    } else {
    }
    %c0 = arith.constant 0 : index
    %c0_1 = arith.constant 0 : index
    %3 = vector.load %arg22[%c0, %c0_1] : memref<16x128xbf16, #tpu.memory_space<vmem>>, vector<16x128xbf16>
    %c0_2 = arith.constant 0 : index
    %c0_3 = arith.constant 0 : index
    %4 = vector.load %arg14[%c0_2, %c0_3] : memref<128x128xbf16, #tpu.memory_space<vmem>>, vector<128x128xbf16>
    %cst = arith.constant dense<0.000000e+00> : vector<16x128xf32>
    %5 = tpu.matmul %3, %4, %cst {dimension_numbers = #tpu.dot_dimension_numbers<[1], [0], [0], [1], [0, 0, 1, 1], [], []>} : vector<16x128xbf16>, vector<128x128xbf16>, vector<16x128xf32> -> vector<16x128xf32>
    %c0_4 = arith.constant 0 : index
    %c0_5 = arith.constant 0 : index
    %6 = vector.load %arg15[%c0_4, %c0_5] : memref<1x128xf32, #tpu.memory_space<vmem>>, vector<1x128xf32>
    %7 = vector.broadcast %6 : vector<1x128xf32> to vector<16x128xf32>
    %8 = arith.addf %5, %7 : vector<16x128xf32>
    %c0_i32_6 = arith.constant 0 : i32
    %9 = arith.cmpi eq, %arg1, %c0_i32_6 : i32
    %10 = arith.extui %9 : i1 to i32
    %c0_i32_7 = arith.constant 0 : i32
    %11 = arith.cmpi ne, %10, %c0_i32_7 : i32
    scf.if %11 {
      %18 = math.exp %8 : vector<16x128xf32>
      %cst_10 = arith.constant 9.99999974E-6 : f32
      %cst_11 = arith.constant 1.000000e+06 : f32
      %19 = vector.broadcast %cst_10 : f32 to vector<16x128xf32>
      %20 = arith.maximumf %19, %18 : vector<16x128xf32>
      %21 = vector.broadcast %cst_11 : f32 to vector<16x128xf32>
      %22 = arith.minimumf %21, %20 : vector<16x128xf32>
      %c0_12 = arith.constant 0 : index
      %c0_13 = arith.constant 0 : index
      %23 = vector.load %arg20[%c0_12, %c0_13] : memref<16x128xf32, #tpu.memory_space<vmem>>, vector<16x128xf32>
      tpu.vector_store %arg20[%c0_12, %c0_13], %22 {strides = array<i32>} : memref<16x128xf32, #tpu.memory_space<vmem>>, vector<16x128xf32>,
    } else {
    }
    %c1_i32 = arith.constant 1 : i32
    %12 = arith.cmpi eq, %arg1, %c1_i32 : i32
    %13 = arith.extui %12 : i1 to i32
    %c0_i32_8 = arith.constant 0 : i32
    %14 = arith.cmpi ne, %13, %c0_i32_8 : i32
    scf.if %14 {
      %cst_10 = arith.constant 2.000000e+01 : f32
      %18 = vector.broadcast %cst_10 : f32 to vector<16x128xf32>
      %19 = arith.cmpf ogt, %8, %18 : vector<16x128xf32>
      %cst_11 = arith.constant 2.000000e+01 : f32
      %20 = vector.broadcast %cst_11 : f32 to vector<16x128xf32>
      %21 = arith.minimumf %8, %20 : vector<16x128xf32>
      %22 = math.exp %21 : vector<16x128xf32>
      %cst_12 = arith.constant 1.000000e+00 : f32
      %23 = vector.broadcast %cst_12 : f32 to vector<16x128xf32>
      %24 = arith.addf %23, %22 : vector<16x128xf32>
      %25 = math.log %24 : vector<16x128xf32>
      %26 = arith.select %19, %8, %25 : vector<16x128xi1>, vector<16x128xf32>
      %cst_13 = arith.constant 9.99999974E-5 : f32
      %cst_14 = arith.constant 1.000000e+04 : f32
      %27 = vector.broadcast %cst_13 : f32 to vector<16x128xf32>
      %28 = arith.maximumf %27, %26 : vector<16x128xf32>
      %29 = vector.broadcast %cst_14 : f32 to vector<16x128xf32>
      %30 = arith.minimumf %29, %28 : vector<16x128xf32>
      %c0_15 = arith.constant 0 : index
      %c0_16 = arith.constant 0 : index
      %31 = vector.load %arg20[%c0_15, %c0_16] : memref<16x128xf32, #tpu.memory_space<vmem>>, vector<16x128xf32>
      tpu.vector_store %arg20[%c0_15, %c0_16], %30 {strides = array<i32>} : memref<16x128xf32, #tpu.memory_space<vmem>>, vector<16x128xf32>,
    } else {
    }
    %c2_i32 = arith.constant 2 : i32
    %15 = arith.cmpi eq, %arg1, %c2_i32 : i32
    %16 = arith.extui %15 : i1 to i32
    %c0_i32_9 = arith.constant 0 : i32
    %17 = arith.cmpi ne, %16, %c0_i32_9 : i32
    scf.if %17 {
      %cst_10 = arith.constant 0.000000e+00 : f32
      %18 = vector.broadcast %cst_10 : f32 to vector<16x128xf32>
      %19 = arith.subf %18, %8 : vector<16x128xf32>
      %20 = math.exp %19 : vector<16x128xf32>
      %cst_11 = arith.constant 1.000000e+00 : f32
      %21 = vector.broadcast %cst_11 : f32 to vector<16x128xf32>
      %22 = arith.addf %21, %20 : vector<16x128xf32>
      %23 = tpu.reciprocal %22 : vector<16x128xf32> -> vector<16x128xf32>
      %c0_12 = arith.constant 0 : index
      %c0_13 = arith.constant 0 : index
      %24 = vector.load %arg20[%c0_12, %c0_13] : memref<16x128xf32, #tpu.memory_space<vmem>>, vector<16x128xf32>
      tpu.vector_store %arg20[%c0_12, %c0_13], %23 {strides = array<i32>} : memref<16x128xf32, #tpu.memory_space<vmem>>, vector<16x128xf32>,
    } else {
    }
    return
  }
  func.func @transform_0(%arg0: i32, %arg1: i32) -> (i32, i32) {
    %c0_i32 = arith.constant 0 : i32
    %c0_i32_0 = arith.constant 0 : i32
    return %arg0, %c0_i32 : i32, i32
  }
  func.func @transform_1(%arg0: i32, %arg1: i32) -> (i32, i32) {
    %c0_i32 = arith.constant 0 : i32
    %c0_i32_0 = arith.constant 0 : i32
    return %arg0, %c0_i32 : i32, i32
  }
  func.func @transform_2(%arg0: i32, %arg1: i32) -> (i32, i32) {
    %c0_i32 = arith.constant 0 : i32
    %c0_i32_0 = arith.constant 0 : i32
    %c0_i32_1 = arith.constant 0 : i32
    return %c0_i32, %c0_i32_0 : i32, i32
  }
  func.func @transform_3(%arg0: i32, %arg1: i32) -> (i32, i32) {
    %c0_i32 = arith.constant 0 : i32
    %c0_i32_0 = arith.constant 0 : i32
    %c0_i32_1 = arith.constant 0 : i32
    return %c0_i32, %c0_i32_0 : i32, i32
  }
  func.func @transform_4(%arg0: i32, %arg1: i32) -> (i32, i32) {
    %c0_i32 = arith.constant 0 : i32
    %c0_i32_0 = arith.constant 0 : i32
    %c0_i32_1 = arith.constant 0 : i32
    return %c0_i32, %c0_i32_0 : i32, i32
  }
  func.func @transform_5(%arg0: i32, %arg1: i32) -> (i32, i32) {
    %c0_i32 = arith.constant 0 : i32
    %c0_i32_0 = arith.constant 0 : i32
    %c0_i32_1 = arith.constant 0 : i32
    return %c0_i32, %c0_i32_0 : i32, i32
  }
  func.func @transform_6(%arg0: i32, %arg1: i32) -> (i32, i32) {
    %c0_i32 = arith.constant 0 : i32
    %c0_i32_0 = arith.constant 0 : i32
    %c0_i32_1 = arith.constant 0 : i32
    return %c0_i32, %c0_i32_0 : i32, i32
  }
  func.func @transform_7(%arg0: i32, %arg1: i32) -> (i32, i32) {
    %c0_i32 = arith.constant 0 : i32
    %c0_i32_0 = arith.constant 0 : i32
    %c0_i32_1 = arith.constant 0 : i32
    return %c0_i32, %c0_i32_0 : i32, i32
  }
  func.func @transform_8(%arg0: i32, %arg1: i32) -> (i32, i32) {
    %c0_i32 = arith.constant 0 : i32
    %c0_i32_0 = arith.constant 0 : i32
    %c0_i32_1 = arith.constant 0 : i32
    return %c0_i32, %c0_i32_0 : i32, i32
  }
  func.func @transform_9(%arg0: i32, %arg1: i32) -> (i32, i32) {
    %c0_i32 = arith.constant 0 : i32
    %c0_i32_0 = arith.constant 0 : i32
    %c0_i32_1 = arith.constant 0 : i32
    return %c0_i32, %c0_i32_0 : i32, i32
  }
  func.func @transform_10(%arg0: i32, %arg1: i32) -> (i32, i32) {
    %c0_i32 = arith.constant 0 : i32
    %c0_i32_0 = arith.constant 0 : i32
    %c0_i32_1 = arith.constant 0 : i32
    return %c0_i32, %c0_i32_0 : i32, i32
  }
  func.func @transform_11(%arg0: i32, %arg1: i32) -> (i32, i32) {
    %c0_i32 = arith.constant 0 : i32
    %c0_i32_0 = arith.constant 0 : i32
    %c0_i32_1 = arith.constant 0 : i32
    return %c0_i32, %c0_i32_0 : i32, i32
  }
  func.func @transform_12(%arg0: i32, %arg1: i32) -> (i32, i32) {
    %c0_i32 = arith.constant 0 : i32
    %c0_i32_0 = arith.constant 0 : i32
    return %c0_i32, %arg1 : i32, i32
  }
  func.func @transform_13(%arg0: i32, %arg1: i32) -> (i32, i32) {
    %c0_i32 = arith.constant 0 : i32
    %c0_i32_0 = arith.constant 0 : i32
    return %c0_i32, %arg1 : i32, i32
  }
  func.func @transform_14(%arg0: i32, %arg1: i32) -> (i32, i32) {
    %c0_i32 = arith.constant 0 : i32
    %c0_i32_0 = arith.constant 0 : i32
    %c0_i32_1 = arith.constant 0 : i32
    return %c0_i32, %c0_i32_0 : i32, i32
  }
  func.func @transform_15(%arg0: i32, %arg1: i32) -> (i32, i32) {
    %c0_i32 = arith.constant 0 : i32
    %c0_i32_0 = arith.constant 0 : i32
    %c0_i32_1 = arith.constant 0 : i32
    return %c0_i32, %c0_i32_0 : i32, i32
  }
  func.func @transform_16(%arg0: i32, %arg1: i32) -> (i32, i32) {
    %c0_i32 = arith.constant 0 : i32
    %c0_i32_0 = arith.constant 0 : i32
    return %arg0, %c0_i32 : i32, i32
  }
  func.func @transform_17(%arg0: i32, %arg1: i32) -> (i32, i32) {
    %c0_i32 = arith.constant 0 : i32
    %c0_i32_0 = arith.constant 0 : i32
    return %arg0, %c0_i32 : i32, i32
  }
  func.func @transform_18(%arg0: i32, %arg1: i32) -> (i32, i32) {
    %c0_i32 = arith.constant 0 : i32
    return %arg0, %arg1 : i32, i32
  }
}

</mosaic_0001>

<bundles_post_ra>
// kernel: tpu_custom_call.1
= control target key start
LH: loop header
LB: loop body
LE: loop exit
PB: predicated region body
PF: predicated region fallthrough
CT: control target
= control target key end

     0   :  { %s3619_s0 = inlined_call_operand.hbm [shape: f32[16,128], index: 0, kind: input, shape index: {}]   ;;  %s3620_s1 = inlined_call_operand.hbm [shape: f32[16,128], index: 1, kind: input, shape index: {}]   ;;  %s3621_s2 = inlined_call_operand.hbm [shape: bf16[128,128], index: 2, kind: input, shape index: {}]   ;;  %s3622_s3 = inlined_call_operand.vmem [shape: f32[1,128], index: 3, kind: input, shape index: {}]   ;;  %s3623_s4 = inlined_call_operand.hbm [shape: bf16[128,128], index: 4, kind: input, shape index: {}]   ;;  %s3624_s5 = inlined_call_operand.vmem [shape: f32[1,128], index: 5, kind: input, shape index: {}]   ;;  %s3625_s6 = inlined_call_operand.hbm [shape: bf16[128,128], index: 6, kind: input, shape index: {}]   ;;  %s3626_s7 = inlined_call_operand.vmem [shape: f32[1,128], index: 7, kind: input, shape index: {}]   ;;  %s3627_s8 = inlined_call_operand.hbm [shape: bf16[128,128], index: 8, kind: input, shape index: {}]   ;;  %s3628_s9 = inlined_call_operand.vmem [shape: f32[1,128], index: 9, kind: input, shape index: {}]   ;;  %s3629_s10 = inlined_call_operand.hbm [shape: bf16[128,128], index: 10, kind: input, shape index: {}]   ;;  %s3630_s11 = inlined_call_operand.vmem [shape: f32[1,128], index: 11, kind: input, shape index: {}]   ;;  %s3631_s12 = inlined_call_operand.hbm [shape: bf16[128,384], index: 12, kind: input, shape index: {}]   ;;  %s3632_s13 = inlined_call_operand.vmem [shape: f32[1,384], index: 13, kind: input, shape index: {}]   ;;  %s3633_s14 = inlined_call_operand.hbm [shape: f32[128,128], index: 14, kind: input, shape index: {}]   ;;  %s3634_s15 = inlined_call_operand.vmem [shape: f32[1,128], index: 15, kind: input, shape index: {}]   ;;  %s3635_s16 = inlined_call_operand.hbm [shape: f32[16,128], index: 16, kind: output, shape index: {0}]   ;;  %s3636_s17 = inlined_call_operand.hbm [shape: f32[16,128], index: 17, kind: output, shape index: {1}]   ;;  %s3637_s18 = inlined_call_operand.hbm [shape: f32[16,384], index: 18, kind: output, shape index: {2}]  }
   0x1   :  { %3660 = sst [smem:[#allocation32_spill]] %s3619_s0 }
   0x2   :  { %3661 = sst [smem:[#allocation33_spill]] %s3620_s1 }
   0x3   :  { %3662 = sst [smem:[#allocation34_spill]] %s3621_s2 }
   0x4   :  { %3663 = sst [smem:[#allocation35_spill]] %s3622_s3 }
   0x5   :  { %3664 = sst [smem:[#allocation36_spill]] %s3623_s4 }
   0x6   :  { %3665 = sst [smem:[#allocation37_spill]] %s3624_s5 }
   0x7   :  { %3666 = sst [smem:[#allocation38_spill]] %s3625_s6 }
   0x8   :  { %3667 = sst [smem:[#allocation39_spill]] %s3626_s7 }
   0x9   :  { %3668 = sst [smem:[#allocation40_spill]] %s3627_s8 }
   0xa   :  { %3669 = sst [smem:[#allocation41_spill]] %s3628_s9 }
   0xb   :  { %3670 = sst [smem:[#allocation42_spill]] %s3630_s11 }
   0xc   :  { %3671 = sst [smem:[#allocation43_spill]] %s3632_s13 }
   0xd   :  { %3672 = sst [smem:[#allocation44_spill]] %s3634_s15 }
   0xe   :  { %3673 = sst [smem:[#allocation45_spill]] %s3635_s16 }
   0xf   :  { %3674 = sst [smem:[#allocation46_spill]] %s3636_s17 }
  0x10   :  { %3675 = sst [smem:[#allocation47_spill]] %s3637_s18 }
  0x11   :  { %24 = vsyncpa [#allocation5], 0 }
  0x12   :  { %25 = vsyncpa [#allocation8], 0 }
  0x13   :  { %26 = vsyncpa [#allocation11], 0 }
  0x14   :  { %27 = vsyncpa [#allocation14], 0 }
  0x15   :  { %28 = vsyncpa [#allocation17], 0 }
  0x16   :  { %30 = vsyncpa [#allocation17 + $0x1], 0 }
  0x17   :  { %31 = vsyncpa [#allocation6], 0 }
  0x18   :  { %32 = vsyncpa [#allocation21], 0  ;;  %s3067_s27 = smov 0   ;;  %s3069_s28 = smov 0  }
  0x19   :  { %s3071_s29 = smov 0   ;;  %s3073_s30 = smov 0  }
  0x1a   :  { %s3075_s0 = smov 0   ;;  %s3077_s19 = smov 0  }
  0x1b LB: > { %s3098_s1 = sadd.s32 4294967295, %s2946_s19   ;;  %p1933_p0 = scmp.ge.s32.totalorder %s2946_s19, 1  ;;  %s2946_s19 = sphi %s3077_s19, %s38_s19   ;;  %s2942_s0 = sphi %s3075_s0, %s3736_s0   ;;  %s2938_s30 = sphi %s3073_s30, %s3735_s30   ;;  %s2934_s29 = sphi %s3071_s29, %s3734_s29   ;;  %s2930_s28 = sphi %s3069_s28, %s3733_s28   ;;  %s2926_s27 = sphi %s3067_s27, %s3732_s27  }
  0x1c   : > { %p3646_p1 = scmp.eq.s32.totalorder %s3098_s1, 0  ;;  %p491_p2 = scmp.lt.s32.totalorder %s2946_s19, 4 }
  0x1d   : > { %s2948_s21 = smov [#allocation7]   ;;  %s2949_s23 = smov [#allocation10]  }
  0x1e   : > { %p3103_p3 = pnand %p1933_p0, %p491_p2  ;;  %s522_s22 = sshll.u32 %s2948_s21, 4  ;;  %s3107_s22 = int_to_ptr.vmem [resolvable:$true] %s522_s22 }
  0x1f   : > { %s551_s24 = sshll.u32 %s2949_s23, 4  ;;  %s2950_s25 = smov [#allocation13]   ;;  %s3117_s24 = int_to_ptr.vmem [resolvable:$true] %s551_s24 }
  0x20   : > { %s3676_s20 = scalar_select %p3103_p3, 1, 0 }
  0x21   : > { %p2329_p4 = pneg %p3103_p3  ;;  %s3119_s26 = sshll.u32 %s2950_s25, 4  ;;  %s584_s26 = int_to_ptr.vmem [resolvable:$true] %s3119_s26 }
  0x22   : > { %s3678_s21 = sld [smem:[#allocation33_spill]] }
  0x23   : > { %p3113_p5 = pnand %p2329_p4, %p3646_p1 }
  0x25   : > { %p3129_p7 = pneg %p3113_p5 }
  0x28   : > { %s2530_s16 = scalar_lea.hbm %s3678_s21, 256 }
  0x29   : > { %p2531_p6 = scmp.ne.s32.totalorder %s3678_s21, %s2530_s16  ;;  %p2537_p10 = scmp.lt.u32.totalorder %s2530_s16, %s3678_s21 }
  0x2b   : > { %p2533_p8 = pnand %p3129_p7, %p2531_p6 }
  0x2d   : > { %p2534_p9 = pneg %p2533_p8 }
  0x2f   : > { %p2539_p11 = pnand %p2537_p10, %p2534_p9 }
  0x31   : > { %2542 = shalt.err (!%p2539_p11)
}
  0x32   : > { %s2543_s11 = scalar_lea.vmem %s3107_s22, 256  ;;  %p2551_p2 = scmp.lt.s32.totalorder %s3107_s22, %s3107_s22 }
  0x33   : > { %p2544_p12 = scmp.ne.s32.totalorder %s3107_s22, %s2543_s11  ;;  %p2552_p4 = scmp.lt.s32.totalorder %s2543_s11, %s2543_s11 }
  0x35   : > { %p2546_p13 = pnand %p2544_p12, %p3129_p7  ;;  %p2553_p6 = por %p2552_p4, %p2551_p2 }
  0x37   : > { %p2547_p0 = pneg %p2546_p13 }
  0x39   : > { %p2554_p8 = pnand %p2553_p6, %p2547_p0 }
  0x3b   : > { %2557 = shalt.err (!%p2554_p8)
}
  0x3c   : > { %s3644_s15 = smov 128   ;;  %s3648_s16 = smov 8  }
  0x3d   : > { %2335 = dma.hbm_to_vmem [thread:$0]  (!%p3113_p5), %s3678_s21, 256, %s3107_s22, [#allocation8], %s3644_s15, %s3644_s15, %s3648_s16  }
  0x3e   : > { %s3680_s4 = sld [smem:[#allocation36_spill]] }
  0x44   : > { %s2558_s11 = scalar_lea.hbm %s3680_s4, 1024 }
  0x45   : > { %p2559_p9 = scmp.ne.s32.totalorder %s3680_s4, %s2558_s11  ;;  %p2565_p12 = scmp.lt.u32.totalorder %s2558_s11, %s3680_s4 }
  0x47   : > { %p2561_p10 = pnand %p2559_p9, %p3129_p7 }
  0x49   : > { %p2562_p11 = pneg %p2561_p10 }
  0x4b   : > { %p2567_p13 = pnand %p2565_p12, %p2562_p11 }
  0x4d   : > { %2570 = shalt.err (!%p2567_p13)
}
  0x4e   : > { %s2571_s22 = scalar_lea.vmem %s3117_s24, 1024  ;;  %p2579_p6 = scmp.lt.s32.totalorder %s3117_s24, %s3117_s24 }
  0x4f   : > { %p2572_p0 = scmp.ne.s32.totalorder %s3117_s24, %s2571_s22  ;;  %p2580_p8 = scmp.lt.s32.totalorder %s2571_s22, %s2571_s22 }
  0x51   : > { %p2574_p2 = pnand %p2572_p0, %p3129_p7  ;;  %p2581_p9 = por %p2580_p8, %p2579_p6 }
  0x53   : > { %p2575_p4 = pneg %p2574_p2 }
  0x55   : > { %p2582_p10 = pnand %p2581_p9, %p2575_p4 }
  0x57   : > { %2585 = shalt.err (!%p2582_p10)
}
  0x58   : > { %s3650_s5 = smov 64   ;;  %s3652_s3 = smov 4  }
  0x59   : > { %2341 = dma.hbm_to_vmem [thread:$0]  (!%p3113_p5), %s3680_s4, 1024, %s3117_s24, [#allocation11], %s3650_s5, %s3650_s5, %s3652_s3  }
  0x5a   : > { %s3681_s8 = sld [smem:[#allocation40_spill]] }
  0x60   : > { %s2586_s23 = scalar_lea.hbm %s3681_s8, 1024 }
  0x61   : > { %p2587_p11 = scmp.ne.s32.totalorder %s3681_s8, %s2586_s23  ;;  %p2593_p0 = scmp.lt.u32.totalorder %s2586_s23, %s3681_s8 }
  0x63   : > { %p2589_p12 = pnand %p2587_p11, %p3129_p7 }
  0x65   : > { %p2590_p13 = pneg %p2589_p12 }
  0x67   : > { %p2595_p2 = pnand %p2593_p0, %p2590_p13 }
  0x69   : > { %2598 = shalt.err (!%p2595_p2)
}
  0x6a   : > { %s2599_s7 = scalar_lea.vmem %s584_s26, 1024  ;;  %p2607_p9 = scmp.lt.s32.totalorder %s584_s26, %s584_s26 }
  0x6b   : > { %p2600_p4 = scmp.ne.s32.totalorder %s584_s26, %s2599_s7  ;;  %p2608_p10 = scmp.lt.s32.totalorder %s2599_s7, %s2599_s7 }
  0x6d   : > { %p2602_p6 = pnand %p2600_p4, %p3129_p7  ;;  %p2609_p1 = por %p2608_p10, %p2607_p9 }
  0x6f   : > { %p2603_p8 = pneg %p2602_p6 }
  0x71   : > { %p2610_p3 = pnand %p2609_p1, %p2603_p8 }
  0x73   : > { %2613 = shalt.err (!%p2610_p3)
}
  0x74   : > { %2347 = dma.hbm_to_vmem [thread:$0]  (!%p3113_p5), %s3681_s8, 1024, %s584_s26, [#allocation14], %s3650_s5, %s3650_s5, %s3652_s3  }
  0x75   : > { %s2955_s13 = smov [#allocation18]   ;;  %s2614_s25 = scalar_lea.hbm %s3633_s14, 2048 }
  0x76   : > { %s615_s17 = sshll.u32 %s2955_s13, 4  ;;  %p2615_p1 = scmp.ne.s32.totalorder %s3633_s14, %s2614_s25  ;;  %s616_s17 = int_to_ptr.vmem [resolvable:$true] %s615_s17 }
  0x77   : > { %p2621_p12 = scmp.lt.u32.totalorder %s2614_s25, %s3633_s14 }
  0x78   : > { %p2617_p3 = pnand %p2615_p1, %p3129_p7 }
  0x7a   : > { %p2618_p11 = pneg %p2617_p3 }
  0x7c   : > { %p2623_p13 = pnand %p2621_p12, %p2618_p11 }
  0x7e   : > { %2626 = shalt.err (!%p2623_p13)
}
  0x7f   : > { %s2627_s26 = scalar_lea.vmem %s616_s17, 2048  ;;  %p2635_p6 = scmp.lt.s32.totalorder %s616_s17, %s616_s17 }
  0x80   : > { %p2628_p0 = scmp.ne.s32.totalorder %s616_s17, %s2627_s26  ;;  %p2636_p8 = scmp.lt.s32.totalorder %s2627_s26, %s2627_s26 }
  0x82   : > { %p2630_p2 = pnand %p2628_p0, %p3129_p7  ;;  %p2637_p9 = por %p2636_p8, %p2635_p6 }
  0x84   : > { %p2631_p4 = pneg %p2630_p2 }
  0x86   : > { %p2638_p10 = pnand %p2637_p9, %p2631_p4 }
  0x88   : > { %2641 = shalt.err (!%p2638_p10)
}
  0x89   : > { %s3682_s24 = smov 8   ;;  %s3683_s15 = smov 128  }
  0x8a   : > { %2353 = dma.hbm_to_vmem [thread:$0]  (!%p3113_p5), %s3633_s14, 2048, %s616_s17, [#allocation17], %s3683_s15, %s3683_s15, %s3682_s24  }
  0x8b   : > { %s2956_s18 = smov [#allocation4]   ;;  %s2957_s25 = smov [#allocation9]  }
  0x8c   : > { %s506_s23 = sshll.u32 %s2956_s18, 4  ;;  %s535_s11 = sshll.u32 %s2957_s25, 4  ;;  %s507_s23 = int_to_ptr.vmem [resolvable:$true] %s506_s23  ;;  %s3222_s11 = int_to_ptr.vmem [resolvable:$true] %s535_s11 }
  0x8d   : > { %s3684_s26 = sld [smem:[#allocation32_spill]] }
  0x93   : > { %s2642_s5 = scalar_lea.hbm %s3684_s26, 256 }
  0x94   : > { %p2643_p1 = scmp.ne.s32.totalorder %s3684_s26, %s2642_s5  ;;  %p2649_p12 = scmp.lt.u32.totalorder %s2642_s5, %s3684_s26 }
  0x96   : > { %p2645_p3 = pnand %p2643_p1, %p3129_p7 }
  0x98   : > { %p2646_p11 = pneg %p2645_p3 }
  0x9a   : > { %p2651_p13 = pnand %p2649_p12, %p2646_p11 }
  0x9c   : > { %2654 = shalt.err (!%p2651_p13)
}
  0x9d   : > { %s2655_s13 = scalar_lea.vmem %s507_s23, 256  ;;  %p2663_p6 = scmp.lt.s32.totalorder %s507_s23, %s507_s23 }
  0x9e   : > { %p2656_p0 = scmp.ne.s32.totalorder %s507_s23, %s2655_s13  ;;  %p2664_p8 = scmp.lt.s32.totalorder %s2655_s13, %s2655_s13 }
  0xa0   : > { %p2658_p2 = pnand %p2656_p0, %p3129_p7  ;;  %p2665_p9 = por %p2664_p8, %p2663_p6 }
  0xa2   : > { %p2659_p4 = pneg %p2658_p2 }
  0xa4   : > { %p2666_p10 = pnand %p2665_p9, %p2659_p4 }
  0xa6   : > { %2669 = shalt.err (!%p2666_p10)
}
  0xa7   : > { %2332 = dma.hbm_to_vmem [thread:$0]  (!%p3113_p5), %s3684_s26, 256, %s507_s23, [#allocation5], %s3683_s15, %s3683_s15, %s3682_s24  }
  0xa8   : > { %s3685_s25 = sld [smem:[#allocation34_spill]] }
  0xae   : > { %s2670_s22 = scalar_lea.hbm %s3685_s25, 1024 }
  0xaf   : > { %p2671_p1 = scmp.ne.s32.totalorder %s3685_s25, %s2670_s22  ;;  %p2677_p12 = scmp.lt.u32.totalorder %s2670_s22, %s3685_s25 }
  0xb1   : > { %p2673_p3 = pnand %p2671_p1, %p3129_p7 }
  0xb3   : > { %p2674_p11 = pneg %p2673_p3 }
  0xb5   : > { %p2679_p13 = pnand %p2677_p12, %p2674_p11 }
  0xb7   : > { %2682 = shalt.err (!%p2679_p13)
}
  0xb8   : > { %s2683_s24 = scalar_lea.vmem %s3222_s11, 1024  ;;  %p2691_p6 = scmp.lt.s32.totalorder %s3222_s11, %s3222_s11 }
  0xb9   : > { %p2684_p0 = scmp.ne.s32.totalorder %s3222_s11, %s2683_s24  ;;  %p2692_p8 = scmp.lt.s32.totalorder %s2683_s24, %s2683_s24 }
  0xbb   : > { %p2686_p2 = pnand %p2684_p0, %p3129_p7  ;;  %p2693_p9 = por %p2692_p8, %p2691_p6 }
  0xbd   : > { %p2687_p4 = pneg %p2686_p2 }
  0xbf   : > { %p2694_p10 = pnand %p2693_p9, %p2687_p4 }
  0xc1   : > { %2697 = shalt.err (!%p2694_p10)
}
  0xc2   : > { %s3686_s15 = smov 4   ;;  %s3687_s23 = smov 64  }
  0xc3   : > { %2338 = dma.hbm_to_vmem [thread:$0]  (!%p3113_p5), %s3685_s25, 1024, %s3222_s11, [#allocation8], %s3687_s23, %s3687_s23, %s3686_s15  }
  0xc4   : > { %s2958_s3 = smov [#allocation12]   ;;  %s2959_s22 = smov [#allocation15]  }
  0xc5   : > { %s567_s18 = sshll.u32 %s2958_s3, 4  ;;  %s599_s7 = sshll.u32 %s2959_s22, 4  ;;  %s568_s18 = int_to_ptr.vmem [resolvable:$true] %s567_s18  ;;  %s3271_s7 = int_to_ptr.vmem [resolvable:$true] %s599_s7 }
  0xc6   : > { %s3688_s6 = sld [smem:[#allocation38_spill]] }
  0xcc   : > { %s2698_s13 = scalar_lea.hbm %s3688_s6, 1024 }
  0xcd   : > { %p2699_p1 = scmp.ne.s32.totalorder %s3688_s6, %s2698_s13  ;;  %p2705_p12 = scmp.lt.u32.totalorder %s2698_s13, %s3688_s6 }
  0xcf   : > { %p2701_p3 = pnand %p2699_p1, %p3129_p7 }
  0xd1   : > { %p2702_p11 = pneg %p2701_p3 }
  0xd3   : > { %p2707_p13 = pnand %p2705_p12, %p2702_p11 }
  0xd5   : > { %2710 = shalt.err (!%p2707_p13)
}
  0xd6   : > { %s2711_s5 = scalar_lea.vmem %s568_s18, 1024  ;;  %p2719_p6 = scmp.lt.s32.totalorder %s568_s18, %s568_s18 }
  0xd7   : > { %p2712_p0 = scmp.ne.s32.totalorder %s568_s18, %s2711_s5  ;;  %p2720_p8 = scmp.lt.s32.totalorder %s2711_s5, %s2711_s5 }
  0xd9   : > { %p2714_p2 = pnand %p2712_p0, %p3129_p7  ;;  %p2721_p9 = por %p2720_p8, %p2719_p6 }
  0xdb   : > { %p2715_p4 = pneg %p2714_p2 }
  0xdd   : > { %p2722_p10 = pnand %p2721_p9, %p2715_p4 }
  0xdf   : > { %2725 = shalt.err (!%p2722_p10)
}
  0xe0   : > { %2344 = dma.hbm_to_vmem [thread:$0]  (!%p3113_p5), %s3688_s6, 1024, %s568_s18, [#allocation11], %s3687_s23, %s3687_s23, %s3686_s15  }
  0xe1   : > { %s2726_s17 = scalar_lea.hbm %s3629_s10, 1024 }
  0xe2   : > { %p2727_p1 = scmp.ne.s32.totalorder %s3629_s10, %s2726_s17  ;;  %p2733_p12 = scmp.lt.u32.totalorder %s2726_s17, %s3629_s10 }
  0xe4   : > { %p2729_p3 = pnand %p2727_p1, %p3129_p7 }
  0xe6   : > { %p2730_p11 = pneg %p2729_p3 }
  0xe8   : > { %p2735_p13 = pnand %p2733_p12, %p2730_p11 }
  0xea   : > { %2738 = shalt.err (!%p2735_p13)
}
  0xeb   : > { %s2739_s18 = scalar_lea.vmem %s3271_s7, 1024  ;;  %p2747_p6 = scmp.lt.s32.totalorder %s3271_s7, %s3271_s7 }
  0xec   : > { %p2740_p0 = scmp.ne.s32.totalorder %s3271_s7, %s2739_s18  ;;  %p2748_p8 = scmp.lt.s32.totalorder %s2739_s18, %s2739_s18 }
  0xee   : > { %p2742_p2 = pnand %p2740_p0, %p3129_p7  ;;  %p2749_p9 = por %p2748_p8, %p2747_p6 }
  0xf0   : > { %p2743_p4 = pneg %p2742_p2 }
  0xf2   : > { %p2750_p10 = pnand %p2749_p9, %p2743_p4 }
  0xf4   : > { %2753 = shalt.err (!%p2750_p10)
}
  0xf5   : > { %2350 = dma.hbm_to_vmem [thread:$0]  (!%p3113_p5), %s3629_s10, 1024, %s3271_s7, [#allocation14], %s3687_s23, %s3687_s23, %s3686_s15  }
  0xf6   : > { %s3654_s9 = sadd.s32 4294967294, %s2946_s19   ;;  %s47_s2 = sadd.s32 1, %s2942_s0 }
  0xf7   : > { %p48_p7 = scmp.ge.s32.totalorder %s47_s2, 3  ;;  %s319_s3 = sadd.s32 1, %s2934_s29 }
  0xf8   : > { %p326_p1 = scmp.ne.s32.totalorder %s2934_s29, %s2930_s28  ;;  %p327_p3 = scmp.eq.s32.totalorder %s2946_s19, 0 }
  0xf9   : > { %s3738_s2 = smov (%p48_p7, %s47_s2), 0  ;;  %p332_p12 = scmp.ne.s32.totalorder %s2930_s28, %s2926_s27 }
  0xfa   : > { %p3328_p11 = por %p327_p3, %p326_p1  ;;  %s316_s7 = ssub.s32 %s2942_s0, %s3738_s2 }
  0xfb   : > { %p3655_p5 = scmp.eq.s32.totalorder %s3098_s1, 2  ;;  %p317_p13 = scmp.eq.s32.totalorder %s316_s7, 0 }
  0xfc   : > { %p3690_p0 = scmp.eq.s32.totalorder %s3098_s1, 0  ;;  %p484_p6 = scmp.eq.s32.totalorder %s3654_s9, 2 }
  0xfd   : > { %p3345_p4 = por %p3655_p5, %p326_p1  ;;  %p2370_p9 = scmp.lt.s32.totalorder %s2946_s19, 3 }
  0xfe   : > { %p3339_p2 = por %p3690_p0, %p332_p12  ;;  %p3354_p8 = por %p484_p6, %p332_p12 }
  0xff   : > { %s3692_s17 = scalar_select %p3345_p4, 1, 0 }
 0x100   : > { %s3352_s13 = scalar_select %p317_p13, %s2934_s29, %s319_s3  }
 0x101   : > { %s3693_s27 = scalar_select %p3354_p8, 1, 0 }
 0x102   : > { %s632_s24 = sand.u32 1, %s2946_s19   ;;  %s634_s4 = sand.u32 1, %s2934_s29  }
 0x103   : > { %s1943_s11 = sshll.u32 %s634_s4, 6  ;;  %s1944_s18 = sshll.u32 %s2942_s0, 6 }
 0x104   : > { %s3365_s7 = scalar_lea.hbm %s3631_s12, %s1944_s18  ;;  %s636_s3 = scalar_lea.vmem [#allocation16], %s1943_s11 }
 0x105   : > { %s642_s9 = sshll.u32 %s636_s3, 4  ;;  %p3371_p10 = pnand %p2370_p9, %p3328_p11  ;;  %s3367_s9 = int_to_ptr.vmem [resolvable:$true] %s642_s9 }
 0x106   : > { %s3375_s4 = scalar_lea.sflag [#allocation17], %s632_s24  ;;  %s2754_s5 = scalar_lea.hbm %s3365_s7, 1024 }
 0x107   : > { %p2755_p7 = scmp.ne.s32.totalorder %s3365_s7, %s2754_s5  ;;  %p2756_p1 = pneg %p3371_p10 }
 0x108   : > { %s2759_s22 = scalar_lea.hbm %s3631_s12, 3072  ;;  %p2760_p11 = scmp.lt.u32.totalorder %s3365_s7, %s3631_s12 }
 0x109   : > { %p2757_p3 = pnand %p2756_p1, %p2755_p7  ;;  %p2761_p13 = scmp.lt.u32.totalorder %s2759_s22, %s2754_s5 }
 0x10a   : > { %p2763_p6 = scmp.lt.u32.totalorder %s2754_s5, %s3365_s7 }
 0x10b   : > { %p2758_p12 = pneg %p2757_p3  ;;  %p2762_p0 = por %p2761_p13, %p2760_p11 }
 0x10d   : > { %p2764_p9 = por %p2763_p6, %p2762_p0 }
 0x10f   : > { %p2765_p5 = pnand %p2764_p9, %p2758_p12 }
 0x111   : > { %2768 = shalt.err (!%p2765_p5)
}
 0x112   : > { %s2769_s24 = scalar_lea.vmem %s3367_s9, 1024  ;;  %s2960_s11 = smov [#allocation16]  }
 0x113   : > { %p2770_p7 = scmp.ne.s32.totalorder %s3367_s9, %s2769_s24  ;;  %s2774_s18 = sshll.u32 %s2960_s11, 4  ;;  %s2775_s18 = int_to_ptr.vmem [resolvable:$false] %s2774_s18 }
 0x114   : > { %s2776_s8 = scalar_lea.vmem %s2775_s18, 2048  ;;  %p2777_p4 = scmp.lt.s32.totalorder %s3367_s9, %s2775_s18 }
 0x115   : > { %p2772_p3 = pnand %p2770_p7, %p2756_p1  ;;  %p2778_p11 = scmp.lt.s32.totalorder %s2776_s8, %s2769_s24 }
 0x117   : > { %p2773_p8 = pneg %p2772_p3  ;;  %p2779_p13 = por %p2778_p11, %p2777_p4 }
 0x119   : > { %p2780_p0 = pnand %p2779_p13, %p2773_p8 }
 0x11b   : > { %2783 = shalt.err (!%p2780_p0)
}
 0x11c   : > { %s2961_s5 = smov 192   ;;  %p3695_p5 = scmp.ne.s32.totalorder %s3676_s20, 0 }
 0x11d   : > { %2357 = dma.hbm_to_vmem [thread:$0]  (!%p3371_p10), %s3365_s7, 1024, %s3367_s9, %s3375_s4, %s2961_s5, %s3687_s23, %s3686_s15  }
 0x11e   : > { %660 = sbr.rel (%p3695_p5) target bundleno = 1880 (0x758), region = 84  ;;  %p3696_p1 = scmp.eq.s32.totalorder (!%p3695_p5), %s3098_s1, 0 }
 0x125   : > { %2889 = dma.done.wait (%p3696_p1), [#allocation5], 256   ;;  %p3697_p12 = pmov %p3696_p1 }
 0x126   : > { %p3698_p4 = pmov %p3696_p1 }
 0x127   : > { %2891 = vsyncadd (%p3697_p12), [#allocation5], 4294967040 }
 0x128   : > { %2893 = dma.done.wait (%p3698_p4), [#allocation8], 1280   ;;  %p3699_p8 = pmov %p3696_p1 }
 0x129   : > { %p3700_p6 = pmov %p3696_p1 }
 0x12a   : > { %2895 = vsyncadd (%p3699_p8), [#allocation8], 4294966016 }
 0x12b   : > { %2897 = dma.done.wait (%p3700_p6), [#allocation11], 2048   ;;  %p3701_p10 = pmov %p3696_p1 }
 0x12c   : > { %p3702_p9 = pmov %p3696_p1 }
 0x12d   : > { %2899 = vsyncadd (%p3701_p10), [#allocation11], 4294965248 }
 0x12e   : > { %2901 = dma.done.wait (%p3702_p9), [#allocation14], 2048   ;;  %p3703_p7 = pmov %p3696_p1 }
 0x12f   : > { %s3657_s6 = sand.u32 1, %s3098_s1   ;;  %s692_s20 = sand.u32 1, %s2930_s28  }
 0x130   : > { %2903 = vsyncadd (%p3703_p7), [#allocation14], 4294965248  ;;  %s1953_s15 = sshll.u32 %s692_s20, 6  ;;  %s691_s23 = scalar_lea.sflag [#allocation17], %s3657_s6 }
 0x131   : > { %s3427_s9 = scalar_lea.vmem [#allocation16], %s1953_s15 }
 0x132   : > { %2905 = dma.done.wait (%p3339_p2), %s691_s23, 1024  }
 0x133   : > { %2907 = vsyncadd (%p3339_p2), %s691_s23, 4294966272  ;;  %p3704_p3 = pmov %p3696_p1 }
 0x134   : > { %p3705_p11 = pmov %p3696_p1 }
 0x135   : > { %2909 = dma.done.wait (%p3704_p3), [#allocation17], 2048  }
 0x136   : > { %2911 = vsyncadd (%p3705_p11), [#allocation17], 4294965248  ;;  %s1955_s7 = sshll.u32 %s692_s20, 4  ;;  %p756_p13 = scmp.lt.s32.totalorder %s2938_s30, 2 }
 0x137   : > { %s3706_s24 = sld [smem:[#allocation43_spill]]  ;;  %s3445_s18 = scalar_lea.vmem [#allocation22], %s1955_s7 }
 0x138   : > { %s3439_s4 = scalar_select %p756_p13, %s2938_s30, 2 }
 0x139   : > { %p1956_p2 = scmp.ne.s32.totalorder %s2938_s30, 0 }
 0x13a   : > { %v2454_v0 = vld [vmem:[#allocation9] sm:$0xff] (!%p1956_p2)   ;;  %v2455_v1 = vld [vmem:[#allocation9 + $0x8] sm:$0xff] (!%p1956_p2)   ;;  %v2456_v2 = vld [vmem:[#allocation9 + $0x10] sm:$0xff] (!%p1956_p2)   ;;  %s3707_s5 = sld [smem:[#allocation35_spill]] (!%p1956_p2)  ;;  %v2962_v48 = vmov (!%p1956_p2), 0.0   ;;  %s3708_s23 = sld [smem:[#allocation37_spill]] (!%p1956_p2) }
 0x13b   : > { %766 = sbr.rel (%p1956_p2) target bundleno = 1451 (0x5ab), region = 124  ;;  %2098 = vmatprep.subr.bf16.mxu0 (!%p1956_p2), %v2454_v0  ;;  %v2457_v3 = vld [vmem:[#allocation9 + $0x18] sm:$0xff] (!%p1956_p2)   ;;  %v767_v4 = vld [vmem:[#allocation4] sm:$0xff] (!%p1956_p2)  ;;  %v768_v5 = vld [vmem:[#allocation4 + $0x8] sm:$0xff] (!%p1956_p2)  ;;  %vm2963_vm0 = vmmov (!%p1956_p2), 0   ;;  %s3709_s3 = sld [smem:[#allocation39_spill]] (!%p1956_p2) }
 0x13c   : > { %2099 = vmatpush3.bf16.msra.mxu0 (!%p1956_p2), %v2454_v0  ;;  %v769_v6 = vld [vmem:[#allocation7] sm:$0xff] (!%p1956_p2)  ;;  %v770_v7 = vld [vmem:[#allocation7 + $0x8] sm:$0xff] (!%p1956_p2)  ;;  %v2462_v10 = vld [vmem:[#allocation10] sm:$0xff] (!%p1956_p2)   ;;  %v775_v21 = vpack.c.bf16 (!%p1956_p2), %v768_v5, %v767_v4  ;;  %s3710_s8 = sld [smem:[#allocation41_spill]] (!%p1956_p2)  ;;  %s3711_s15 = sld [smem:[#allocation44_spill]] (!%p1956_p2) }
 0x13d   : > { %s758_s11 = scalar_lea.vmem %s3706_s24, %s3439_s4  ;;  %2100 = vmatprep.subr.bf16.mxu0 (!%p1956_p2), %v2455_v1  ;;  %v771_v8 = vadd.f32 (!%p1956_p2), %v769_v6, %v767_v4  ;;  %v772_v9 = vadd.f32 (!%p1956_p2), %v770_v7, %v768_v5  ;;  %v2463_v11 = vld [vmem:[#allocation10 + $0x8] sm:$0xff] (!%p1956_p2)   ;;  %v2458_v12 = vld [vmem:[#allocation9 + $0x20] sm:$0xff] (!%p1956_p2)   ;;  %2118 = vmatprep.subr.bf16.mxu1 (!%p1956_p2), %v2462_v10  ;;  %v2464_v14 = vld [vmem:[#allocation10 + $0x10] sm:$0xff] (!%p1956_p2)   ;;  %s3712_s22 = sld [smem:[#allocation42_spill]] (!%p1956_p2) }
 0x13e   : > { %2119 = vmatpush3.bf16.msra.mxu1 (!%p1956_p2), %v2462_v10  ;;  %v2459_v15 = vld [vmem:[#allocation9 + $0x28] sm:$0xff] (!%p1956_p2)   ;;  %v2465_v16 = vld [vmem:[#allocation10 + $0x18] sm:$0xff] (!%p1956_p2)   ;;  %v2460_v17 = vld [vmem:[#allocation9 + $0x30] sm:$0xff] (!%p1956_p2)  }
 0x13f   : > { %v773_v13 = vpack.c.bf16 (!%p1956_p2), %v772_v9, %v771_v8  ;;  %2120 = vmatprep.subr.bf16.mxu1 (!%p1956_p2), %v2463_v11  ;;  %v2466_v18 = vld [vmem:[#allocation10 + $0x20] sm:$0xff] (!%p1956_p2)   ;;  %v2461_v19 = vld [vmem:[#allocation9 + $0x38] sm:$0xff] (!%p1956_p2)   ;;  %v2467_v20 = vld [vmem:[#allocation10 + $0x28] sm:$0xff] (!%p1956_p2)  }
 0x140   : > { %2101 = vmatpush3.bf16.msra.mxu0 (!%p1956_p2), %v2455_v1  ;;  %v2468_v22 = vld [vmem:[#allocation10 + $0x30] sm:$0xff] (!%p1956_p2)   ;;  %v2469_v23 = vld [vmem:[#allocation10 + $0x38] sm:$0xff] (!%p1956_p2)   ;;  %v2470_v24 = vld [vmem:[#allocation12] sm:$0xff] (!%p1956_p2)  }
 0x141   : > { %2102 = vmatprep.subr.bf16.mxu0 (!%p1956_p2), %v2456_v2  ;;  %2114 = vmatprep.mubr.bf16.mxu0 (!%p1956_p2), %v773_v13  ;;  %v2471_v25 = vld [vmem:[#allocation12 + $0x8] sm:$0xff] (!%p1956_p2)   ;;  %v2472_v26 = vld [vmem:[#allocation12 + $0x10] sm:$0xff] (!%p1956_p2)   ;;  %v2473_v27 = vld [vmem:[#allocation12 + $0x18] sm:$0xff] (!%p1956_p2)  }
 0x142   : > { %2121 = vmatpush3.bf16.msra.mxu1 %v2463_v11  ;;  %v2474_v28 = vld [vmem:[#allocation12 + $0x20] sm:$0xff]   ;;  %v2475_v29 = vld [vmem:[#allocation12 + $0x28] sm:$0xff]   ;;  %v1957_v30 = vld [vmem:[%s3707_s5] ss:$0 sm:$0xff] }
 0x143   : > { %2122 = vmatprep.subr.bf16.mxu1 %v2464_v14  ;;  %v2476_v45 = vld [vmem:[#allocation12 + $0x30] sm:$0xff]   ;;  %v2477_v46 = vld [vmem:[#allocation12 + $0x38] sm:$0xff]   ;;  %v2478_v47 = vld [vmem:[#allocation13] sm:$0xff]  }
 0x144   : > { %2103 = vmatpush3.bf16.msra.mxu0 %v2456_v2  ;;  %v2479_v49 = vld [vmem:[#allocation13 + $0x8] sm:$0xff]   ;;  %v2480_v50 = vld [vmem:[#allocation13 + $0x10] sm:$0xff]   ;;  %v2481_v51 = vld [vmem:[#allocation13 + $0x18] sm:$0xff]  }
 0x145   : > { %2104 = vmatprep.subr.bf16.mxu0 %v2457_v3  ;;  %v2482_v52 = vld [vmem:[#allocation13 + $0x20] sm:$0xff]   ;;  %v2483_v53 = vld [vmem:[#allocation13 + $0x28] sm:$0xff]   ;;  %v1966_v54 = vld [vmem:[%s3708_s23] ss:$0 sm:$0xff] }
 0x146   : > { %2123 = vmatpush3.bf16.msra.mxu1 %v2464_v14  ;;  %v2484_v5 = vld [vmem:[#allocation13 + $0x30] sm:$0xff]   ;;  %v2485_v6 = vld [vmem:[#allocation13 + $0x38] sm:$0xff]   ;;  %v1383_v7 = vld [vmem:[#allocation18] sm:$0xff] }
 0x147   : > { %2124 = vmatprep.subr.bf16.mxu1 %v2465_v16  ;;  %v1384_v8 = vld [vmem:[#allocation18 + $0x8] sm:$0xff]  ;;  %v1975_v10 = vld [vmem:[%s3709_s3] ss:$0 sm:$0xff] }
 0x148   : > { %2105 = vmatpush3.bf16.msra.mxu0 %v2457_v3  ;;  %v2253_v9 = vpack.c.bf16 %v1384_v8, %v1383_v7 }
 0x149   : > { %2106 = vmatprep.subr.bf16.mxu0 %v2458_v12 }
 0x14a   : > { %2125 = vmatpush3.bf16.msra.mxu1 %v2465_v16 }
 0x14b   : > { %2126 = vmatprep.subr.bf16.mxu1 %v2466_v18 }
 0x14c   : > { %2107 = vmatpush3.bf16.msra.mxu0 %v2458_v12 }
 0x14d   : > { %2108 = vmatprep.subr.bf16.mxu0 %v2459_v15 }
 0x14e   : > { %2127 = vmatpush3.bf16.msra.mxu1 %v2466_v18  ;;  %v1385_v18 = vld [vmem:[#allocation18 + $0x10] sm:$0xff] }
 0x14f   : > { %2128 = vmatprep.subr.bf16.mxu1 %v2467_v20 }
 0x150   : > { %2109 = vmatpush3.bf16.msra.mxu0 %v2459_v15 }
 0x151   : > { %2110 = vmatprep.subr.bf16.mxu0 %v2460_v17 }
 0x152   : > { %2129 = vmatpush3.bf16.msra.mxu1 %v2467_v20 }
 0x153   : > { %2130 = vmatprep.subr.bf16.mxu1 %v2468_v22 }
 0x154   : > { %2111 = vmatpush3.bf16.msra.mxu0 %v2460_v17 }
 0x155   : > { %2112 = vmatprep.subr.bf16.mxu0 %v2461_v19 }
 0x156   : > { %2131 = vmatpush3.bf16.msra.mxu1 %v2468_v22 }
 0x157   : > { %2132 = vmatprep.subr.bf16.mxu1 %v2469_v23 }
 0x158   : > { %2113 = vmatpush3.bf16.msra.mxu0 %v2461_v19  ;;  %v1386_v19 = vld [vmem:[#allocation18 + $0x18] sm:$0xff] }
 0x159   : > { %2138 = vmatprep.subr.bf16.mxu0 %v2470_v24 }
 0x15a   : > { %2133 = vmatpush3.bf16.msra.mxu1 %v2469_v23  ;;  %v2257_v23 = vpack.c.bf16 %v1386_v19, %v1385_v18 }
 0x15b   : > { %2115 = vmatmul.mubr.bf16.vlgmr.msra.gmra.mrb[0].mxu0 %v775_v21  ;;  %2158 = vmatprep.subr.bf16.mxu1 %v2962_v48 }
 0x15c   : > { %2139 = vmatpush3.bf16.msra.mxu0 %v2470_v24 }
 0x15d   : > { %2140 = vmatprep.subr.bf16.mxu0 %v2471_v25 }
 0x160   : > { %2141 = vmatpush3.bf16.msra.mxu0 %v2471_v25  ;;  %v1387_v25 = vld [vmem:[#allocation18 + $0x20] sm:$0xff] }
 0x161   : > { %2142 = vmatprep.subr.bf16.mxu0 %v2472_v26 }
 0x164   : > { %2143 = vmatpush3.bf16.msra.mxu0 %v2472_v26  ;;  %v1388_v26 = vld [vmem:[#allocation18 + $0x28] sm:$0xff] }
 0x165   : > { %2144 = vmatprep.subr.bf16.mxu0 %v2473_v27 }
 0x168   : > { %2145 = vmatpush3.bf16.msra.mxu0 %v2473_v27  ;;  %v2261_v27 = vpack.c.bf16 %v1388_v26, %v1387_v25 }
 0x169   : > { %2146 = vmatprep.subr.bf16.mxu0 %v2474_v28 }
 0x16c   : > { %2147 = vmatpush3.bf16.msra.mxu0 %v2474_v28  ;;  %v1389_v28 = vld [vmem:[#allocation18 + $0x30] sm:$0xff] }
 0x16d   : > { %2148 = vmatprep.subr.bf16.mxu0 %v2475_v29 }
 0x170   : > { %2149 = vmatpush3.bf16.msra.mxu0 %v2475_v29  ;;  %v1390_v29 = vld [vmem:[#allocation18 + $0x38] sm:$0xff] }
 0x171   : > { %2150 = vmatprep.subr.bf16.mxu0 %v2476_v45 }
 0x174   : > { %2151 = vmatpush3.bf16.msra.mxu0 %v2476_v45 }
 0x175   : > { %2152 = vmatprep.subr.bf16.mxu0 %v2477_v46 }
 0x178   : > { %2153 = vmatpush3.bf16.msra.mxu0 %v2477_v46  ;;  %v2489_v46 = vld [vmem:[#allocation15 + $0x18] sm:$0xff]  }
 0x179   : > { %2178 = vmatprep.subr.bf16.mxu0 %v2962_v48 }
 0x22e   : > { %v2116_v31 = vpop.f32.mrb[0].mxu0 }
 0x22f   : > { %v893_v32 = vadd.f32 %v2116_v31, %v1957_v30  ;;  %v884_v33 = vpop.f32.mrb[1].mxu0  ;;  %v1391_v31 = vld [vmem:[#allocation18 + $0x40] sm:$0xff] }
 0x230   : > { %v885_v34 = vadd.f32 %v1957_v30, %v884_v33  ;;  %v2117_v35 = vpop.f32.mrb[2].mxu0 }
 0x231   : > { %v896_v36 = vadd.f32 %v2117_v35, %v1957_v30  ;;  %v887_v37 = vpop.f32.mrb[3].mxu0  ;;  %v901_v39 = vmax.f32 %v893_v32, 0.0  ;;  %v1392_v32 = vld [vmem:[#allocation18 + $0x48] sm:$0xff]  ;;  %v1394_v35 = vld [vmem:[#allocation18 + $0x58] sm:$0xff] }
 0x232   : > { %v888_v38 = vadd.f32 %v1957_v30, %v887_v37  ;;  %v899_v41 = vmax.f32 %v885_v34, 0.0  ;;  %v2265_v30 = vpack.c.bf16 %v1390_v29, %v1389_v28  ;;  %v2269_v33 = vpack.c.bf16 %v1392_v32, %v1391_v31  ;;  %v1393_v34 = vld [vmem:[#allocation18 + $0x50] sm:$0xff]  ;;  %v1395_v37 = vld [vmem:[#allocation18 + $0x60] sm:$0xff] }
 0x233   : > { %v902_v40 = vmax.f32 %v896_v36, 0.0  ;;  %v2273_v36 = vpack.c.bf16 %v1394_v35, %v1393_v34 }
 0x234   : > { %v900_v42 = vmax.f32 %v888_v38, 0.0  ;;  %v1396_v38 = vld [vmem:[#allocation18 + $0x68] sm:$0xff] }
 0x235   : > { %v904_v43 = vpack.c.bf16 %v902_v40, %v901_v39  ;;  %v2486_v39 = vld [vmem:[#allocation15] sm:$0xff]   ;;  %v2487_v40 = vld [vmem:[#allocation15 + $0x8] sm:$0xff]  }
 0x236   : > { %v903_v44 = vpack.c.bf16 %v900_v42, %v899_v41  ;;  %v2277_v41 = vpack.c.bf16 %v1396_v38, %v1395_v37  ;;  %v1397_v42 = vld [vmem:[#allocation18 + $0x70] sm:$0xff] }
 0x238   : > { %2134 = vmatprep.mubr.bf16.mxu1 %v903_v44  ;;  %v2488_v44 = vld [vmem:[#allocation15 + $0x10] sm:$0xff]  }
 0x239   : > { %2135 = vmatmul.mubr.bf16.vlgmr.msra.gmra.mrb[0].mxu1 %v904_v43  ;;  %v1398_v43 = vld [vmem:[#allocation18 + $0x78] sm:$0xff] }
 0x23a   : > { %2159 = vmatpush3.bf16.msra.mxu1 %v2478_v47  ;;  %2174 = vmatprep.mubr.msk.bf16.mxu1 %vm2963_vm0, %v2962_v48  ;;  %v2281_v45 = vpack.c.bf16 %v1398_v43, %v1397_v42  ;;  %v2490_v47 = vld [vmem:[#allocation15 + $0x20] sm:$0xff]  }
 0x23b   : > { %2160 = vmatprep.subr.bf16.mxu1 %v2962_v48 }
 0x23e   : > { %2161 = vmatpush3.bf16.msra.mxu1 %v2479_v49  ;;  %v2491_v49 = vld [vmem:[#allocation15 + $0x28] sm:$0xff]  }
 0x23f   : > { %2162 = vmatprep.subr.bf16.mxu1 %v2962_v48 }
 0x242   : > { %2163 = vmatpush3.bf16.msra.mxu1 %v2480_v50  ;;  %v2492_v50 = vld [vmem:[#allocation15 + $0x30] sm:$0xff]  }
 0x243   : > { %2164 = vmatprep.subr.bf16.mxu1 %v2962_v48 }
 0x246   : > { %2165 = vmatpush3.bf16.msra.mxu1 %v2481_v51  ;;  %v2493_v51 = vld [vmem:[#allocation15 + $0x38] sm:$0xff]  }
 0x247   : > { %2166 = vmatprep.subr.bf16.mxu1 %v2962_v48 }
 0x24a   : > { %2167 = vmatpush3.bf16.msra.mxu1 %v2482_v52  ;;  %v1984_v52 = vld [vmem:[%s3710_s8] ss:$0 sm:$0xff] }
 0x24b   : > { %2168 = vmatprep.subr.bf16.mxu1 %v2962_v48 }
 0x24e   : > { %2169 = vmatpush3.bf16.msra.mxu1 %v2483_v53 }
 0x24f   : > { %2170 = vmatprep.subr.bf16.mxu1 %v2962_v48 }
 0x252   : > { %2171 = vmatpush3.bf16.msra.mxu1 %v2484_v5 }
 0x253   : > { %2172 = vmatprep.subr.bf16.mxu1 %v2962_v48 }
 0x256   : > { %2173 = vmatpush3.bf16.msra.mxu1 %v2485_v6 }
 0x257   : > { %2254 = vmatprep.subr.bf16.mxu1 %v2253_v9 }
 0x30c   : > { %v2136_v55 = vpop.f32.mrb[0].mxu1 }
 0x30d   : > { %v1019_v56 = vadd.f32 %v2136_v55, %v1966_v54  ;;  %v1010_v57 = vpop.f32.mrb[1].mxu1 }
 0x30e   : > { %v1011_v58 = vadd.f32 %v1966_v54, %v1010_v57  ;;  %v2137_v59 = vpop.f32.mrb[2].mxu1 }
 0x30f   : > { %v1022_v60 = vadd.f32 %v2137_v59, %v1966_v54  ;;  %v1013_v61 = vpop.f32.mrb[3].mxu1  ;;  %v1027_v63 = vmax.f32 %v1019_v56, 0.0 }
 0x310   : > { %v1014_v62 = vadd.f32 %v1966_v54, %v1013_v61  ;;  %v1025_v1 = vmax.f32 %v1011_v58, 0.0 }
 0x311   : > { %v1028_v0 = vmax.f32 %v1022_v60, 0.0 }
 0x312   : > { %v1026_v2 = vmax.f32 %v1014_v62, 0.0 }
 0x313   : > { %v1030_v3 = vpack.c.bf16 %v1028_v0, %v1027_v63 }
 0x314   : > { %v1029_v4 = vpack.c.bf16 %v1026_v2, %v1025_v1 }
 0x316   : > { %2154 = vmatprep.mubr.bf16.mxu0 %v1029_v4 }
 0x317   : > { %2155 = vmatmul.mubr.bf16.vlgmr.msra.gmra.mrb[4].mxu0 %v1030_v3 }
 0x318   : > { %2194 = vmatprep.mubr.msk.bf16.mxu0 %vm2963_vm0, %v2962_v48  ;;  %2179 = vmatpush3.bf16.msra.mxu0 %v2486_v39 }
 0x319   : > { %2180 = vmatprep.subr.bf16.mxu0 %v2962_v48 }
 0x31c   : > { %2181 = vmatpush3.bf16.msra.mxu0 %v2487_v40 }
 0x31d   : > { %2182 = vmatprep.subr.bf16.mxu0 %v2962_v48 }
 0x320   : > { %2183 = vmatpush3.bf16.msra.mxu0 %v2488_v44 }
 0x321   : > { %2184 = vmatprep.subr.bf16.mxu0 %v2962_v48 }
 0x324   : > { %2185 = vmatpush3.bf16.msra.mxu0 %v2489_v46 }
 0x325   : > { %2186 = vmatprep.subr.bf16.mxu0 %v2962_v48 }
 0x328   : > { %2187 = vmatpush3.bf16.msra.mxu0 %v2490_v47 }
 0x329   : > { %2188 = vmatprep.subr.bf16.mxu0 %v2962_v48 }
 0x32c   : > { %2189 = vmatpush3.bf16.msra.mxu0 %v2491_v49 }
 0x32d   : > { %2190 = vmatprep.subr.bf16.mxu0 %v2962_v48 }
 0x330   : > { %2191 = vmatpush3.bf16.msra.mxu0 %v2492_v50 }
 0x331   : > { %2192 = vmatprep.subr.bf16.mxu0 %v2962_v48  ;;  %v2002_v48 = vld [vmem:[%s3711_s15] ss:$0 sm:$0xff] }
 0x334   : > { %2193 = vmatpush3.bf16.msra.mxu0 %v2493_v51 }
 0x3ea   : > { %v2156_v11 = vpop.f32.mrb[4].mxu0 }
 0x3eb   : > { %v1145_v12 = vadd.f32 %v2156_v11, %v1975_v10  ;;  %v1136_v13 = vpop.f32.mrb[5].mxu0 }
 0x3ec   : > { %v2157_v14 = vpop.f32.mrb[6].mxu0  ;;  %v1137_v20 = vadd.f32 %v1975_v10, %v1136_v13 }
 0x3ed   : > { %1512 = vst [vmem:[#allocation19] sm:$0xff] %v1145_v12  ;;  %v1148_v15 = vadd.f32 %v2157_v14, %v1975_v10  ;;  %v1139_v16 = vpop.f32.mrb[7].mxu0  ;;  %v1399_v17 = vmul.f32 %v1145_v12, %v1145_v12 }
 0x3ee   : > { %v1140_v21 = vadd.f32 %v1975_v10, %v1139_v16 }
 0x3ef   : > { %1513 = vst [vmem:[#allocation19 + $0x8] sm:$0xff] %v1148_v15  ;;  %1401 = vadd.xlane.f32.xlu0 %v1399_v17  ;;  %v1400_v24 = vmul.f32 %v1148_v15, %v1148_v15 }
 0x3f0   : > { %v1151_v22 = vpack.c.bf16 %v1140_v21, %v1137_v20 }
 0x3f2   : > { %2175 = vmatmul.mubr.bf16.vlgmr.msra.gmra.mrb[4].mxu1 %v1151_v22 }
 0x3f3   : > { %2256 = vmatpush3.bf16.msra.mxu1 %v2253_v9  ;;  %1403 = vadd.xlane.f32.xlu0 %v1400_v24  ;;  %v1993_v24 = vld [vmem:[%s3712_s22] ss:$0 sm:$0xff] }
 0x3f4   : > { %2230 = vmatprep.mubr.f32.mxu1 %v1145_v12  ;;  %2258 = vmatprep.subr.bf16.mxu1 %v2257_v23  ;;  %v1499_v12 = vlaneseq }
 0x3f6   : > { %v1500_v13 = vand.u32 127, %v1499_v12 }
 0x3f7   : > { %2260 = vmatpush3.bf16.msra.mxu1 %v2257_v23 }
 0x3f8   : > { %2262 = vmatprep.subr.bf16.mxu1 %v2261_v27  ;;  %vm1501_vm1 = vcmp.lt.s32.totalorder %v1500_v13, 4 }
 0x3fb   : > { %2264 = vmatpush3.bf16.msra.mxu1 %v2261_v27 }
 0x3fc   : > { %2266 = vmatprep.subr.bf16.mxu1 %v2265_v30 }
 0x3ff   : > { %2268 = vmatpush3.bf16.msra.mxu1 %v2265_v30 }
 0x400   : > { %2270 = vmatprep.subr.bf16.mxu1 %v2269_v33 }
 0x403   : > { %2272 = vmatpush3.bf16.msra.mxu1 %v2269_v33 }
 0x404   : > { %2274 = vmatprep.subr.bf16.mxu1 %v2273_v36 }
 0x407   : > { %2276 = vmatpush3.bf16.msra.mxu1 %v2273_v36 }
 0x408   : > { %2278 = vmatprep.subr.bf16.mxu1 %v2277_v41 }
 0x40b   : > { %2280 = vmatpush3.bf16.msra.mxu1 %v2277_v41 }
 0x40c   : > { %2282 = vmatprep.subr.bf16.mxu1 %v2281_v45 }
 0x40f   : > { %2284 = vmatpush3.bf16.msra.mxu1 %v2281_v45 }
 0x412   : > { %2231 = vmatmul.mubr.f32.vlgmr.msra.gmra.mrb[8].mxu1 %v1148_v15 }
 0x47c   : > { %v1402_v62 = vpop.xlane.xlu0 %1401 }
 0x47d   : > { %v1487_v4 = vadd.f32 %v2002_v48, %v1402_v62 }
 0x480   : > { %v1404_v63 = vpop.xlane.xlu0 %1403 }
 0x481   : > { %v1488_v1 = vadd.f32 %v2002_v48, %v1404_v63 }
 0x4c5   : > { %v1257_v53 = vpop.f32.mrb[4].mxu1 }
 0x4c6   : > { %v1258_v54 = vadd.f32 %v1984_v52, %v1257_v53  ;;  %v2176_v55 = vpop.f32.mrb[5].mxu1 }
 0x4c7   : > { %v1260_v56 = vpop.f32.mrb[6].mxu1 }
 0x4c8   : > { %v1261_v57 = vadd.f32 %v1984_v52, %v1260_v56  ;;  %v2177_v58 = vpop.f32.mrb[7].mxu1  ;;  %v1264_v59 = vmax.f32 %v1258_v54, 0.0 }
 0x4ca   : > { %v1265_v60 = vmax.f32 %v1261_v57, 0.0 }
 0x4cc   : > { %v1266_v61 = vpack.c.bf16 %v1265_v60, %v1264_v59 }
 0x4ce   : > { %2195 = vmatmul.mubr.bf16.vlgmr.msra.gmra.mrb[8].mxu0 %v1266_v61 }
 0x4e5   : > { %v2232_v0 = vpop.f32.mrb[8].mxu1 }
 0x4e6   : > { %v1490_v2 = vmul.f32 2.0, %v2232_v0  ;;  %v1471_v3 = vpop.f32.mrb[9].mxu1 }
 0x4e7   : > { %v1489_v5 = vmul.f32 2.0, %v1471_v3 }
 0x4e8   : > { %v1492_v6 = vsub.f32 %v1488_v1, %v1490_v2 }
 0x4e9   : > { %v1491_v7 = vsub.f32 %v1487_v4, %v1489_v5 }
 0x4ea   : > { %v1494_v8 = vmax.f32 %v1492_v6, 0.0 }
 0x4eb   : > { %v1493_v9 = vmax.f32 %v1491_v7, 0.0 }
 0x4ec   : > { %v1496_v10 = vadd.f32 1.0, %v1494_v8 }
 0x4ed   : > { %v1495_v11 = vadd.f32 1.0, %v1493_v9 }
 0x4ef   : > { %2494 = vrcp.f32 %v1495_v11 }
 0x4f0   : > { %2496 = vrcp.f32 %v1496_v10 }
 0x4f9   : > { %v2495_v14 = vpop.eup %2494 }
 0x4fa   : > { %v1502_v15 = vsel %vm1501_vm1, %v2495_v14, 0.0  ;;  %v2497_v16 = vpop.eup %2496 }
 0x4fb   : > { %1504 = vadd.xlane.f32.xlu1 %v1502_v15  ;;  %v1503_v17 = vsel %vm1501_vm1, %v2497_v16, 0.0 }
 0x4ff   : > { %1506 = vadd.xlane.f32.xlu1 %v1503_v17 }
 0x588   : > { %v1505_v18 = vpop.xlane.xlu1 %1504 }
 0x589   : > { %2498 = vrcp.f32 %v1505_v18 }
 0x58c   : > { %v1507_v19 = vpop.xlane.xlu1 %1506 }
 0x58d   : > { %2500 = vrcp.f32 %v1507_v19 }
 0x593   : > { %v2499_v20 = vpop.eup %2498 }
 0x594   : > { %v1510_v21 = vmul.f32 %v2499_v20, %v1502_v15 }
 0x596   : > { %1514 = vst [vmem:[#allocation20] sm:$0xff] %v1510_v21 }
 0x597   : > { %v2501_v22 = vpop.eup %2500 }
 0x598   : > { %v1511_v23 = vmul.f32 %v2501_v22, %v1503_v17 }
 0x59a   : > { %1515 = vst [vmem:[#allocation20 + $0x8] sm:$0xff] %v1511_v23 }
 0x5a1   : > { %v1372_v25 = vpop.f32.mrb[8].mxu0 }
 0x5a2   : > { %v1373_v26 = vadd.f32 %v1993_v24, %v1372_v25  ;;  %v2196_v27 = vpop.f32.mrb[9].mxu0 }
 0x5a3   : > { %v1375_v28 = vpop.f32.mrb[10].mxu0 }
 0x5a4   : > { %v1376_v29 = vadd.f32 %v1993_v24, %v1375_v28  ;;  %v2197_v30 = vpop.f32.mrb[11].mxu0  ;;  %v1379_v31 = vmax.f32 %v1373_v26, 0.0 }
 0x5a6   : > { %v1380_v32 = vmax.f32 %v1376_v29, 0.0 }
 0x5a8   : > { %v1381_v33 = vpack.c.bf16 %v1380_v32, %v1379_v31 }
 0x5aa   : > { %1382 = vst [vmem:[#allocation3] sm:$0xff] %v1381_v33 }
 0x5ab PF: > { %v2502_v34 = vld [vmem:[%s3427_s9] sm:$0xff]   ;;  %v2964_v35 = vmov 0.0   ;;  %v2503_v36 = vld [vmem:[%s3427_s9 + $0x8] sm:$0xff]   ;;  %vm2965_vm2 = vmmov 0   ;;  %v2504_v37 = vld [vmem:[%s3427_s9 + $0x10] sm:$0xff]  }
 0x5ac   : > { %2233 = vmatprep.subr.bf16.mxu0 %v2964_v35  ;;  %2249 = vmatprep.mubr.msk.bf16.mxu0 %vm2965_vm2, %v2964_v35  ;;  %v2505_v38 = vld [vmem:[%s3427_s9 + $0x18] sm:$0xff]   ;;  %v2506_v39 = vld [vmem:[%s3427_s9 + $0x20] sm:$0xff]   ;;  %v2507_v40 = vld [vmem:[%s3427_s9 + $0x28] sm:$0xff]  }
 0x5ad   : > { %2234 = vmatpush3.bf16.msra.mxu0 %v2502_v34  ;;  %v2508_v41 = vld [vmem:[%s3427_s9 + $0x30] sm:$0xff]   ;;  %v2509_v42 = vld [vmem:[%s3427_s9 + $0x38] sm:$0xff]  }
 0x5ae   : > { %2235 = vmatprep.subr.bf16.mxu0 %v2964_v35  ;;  %v2003_v44 = vld [vmem:[%s758_s11] ss:$0 sm:$0xff] }
 0x5b1   : > { %2236 = vmatpush3.bf16.msra.mxu0 %v2503_v36  ;;  %v1516_v43 = vld [vmem:[#allocation3] sm:$0xff] }
 0x5b2   : > { %2237 = vmatprep.subr.bf16.mxu0 %v2964_v35 }
 0x5b5   : > { %2238 = vmatpush3.bf16.msra.mxu0 %v2504_v37 }
 0x5b6   : > { %2239 = vmatprep.subr.bf16.mxu0 %v2964_v35 }
 0x5b9   : > { %2240 = vmatpush3.bf16.msra.mxu0 %v2505_v38 }
 0x5ba   : > { %2241 = vmatprep.subr.bf16.mxu0 %v2964_v35 }
 0x5bd   : > { %2242 = vmatpush3.bf16.msra.mxu0 %v2506_v39 }
 0x5be   : > { %2243 = vmatprep.subr.bf16.mxu0 %v2964_v35 }
 0x5c1   : > { %2244 = vmatpush3.bf16.msra.mxu0 %v2507_v40 }
 0x5c2   : > { %2245 = vmatprep.subr.bf16.mxu0 %v2964_v35 }
 0x5c5   : > { %2246 = vmatpush3.bf16.msra.mxu0 %v2508_v41 }
 0x5c6   : > { %2247 = vmatprep.subr.bf16.mxu0 %v2964_v35 }
 0x5c9   : > { %2248 = vmatpush3.bf16.msra.mxu0 %v2509_v42 }
 0x5cc   : > { %2250 = vmatmul.mubr.bf16.vlgmr.msra.gmra.mrb[0].mxu0 %v1516_v43 }
 0x69c   : > { %1631 = sbr.rel (%p1956_p2) target bundleno = 1718 (0x6b6), region = 128 }
 0x69f   : > { %v1622_v45 = vpop.f32.mrb[0].mxu0 }
 0x6a0   : > { %v1623_v46 = vadd.f32 %v2003_v44, %v1622_v45  ;;  %v2251_v47 = vpop.f32.mrb[1].mxu0 }
 0x6a1   : > { %v1625_v49 = vpop.f32.mrb[2].mxu0 }
 0x6a2   : > { %v1626_v50 = vadd.f32 %v2003_v44, %v1625_v49  ;;  %v2252_v51 = vpop.f32.mrb[3].mxu0  ;;  %v1632_v52 = vmul.f32 (!%p1956_p2), 1.442695, %v1623_v46 }
 0x6a4   : > { %v1634_v53 = vmul.f32 1.442695, %v1626_v50  ;;  %2510 = vpow2.f32 %v1632_v52 }
 0x6a6   : > { %2512 = vpow2.f32 %v1634_v53 }
 0x6ae   : > { %v2511_v54 = vpop.eup %2510 }
 0x6af   : > { %v1636_v56 = vmax.f32 %v2511_v54, 1e-05 }
 0x6b0   : > { %v2513_v55 = vpop.eup %2512 }
 0x6b1   : > { %v1637_v57 = vmax.f32 %v2513_v55, 1e-05  ;;  %v1638_v58 = vmin.f32 %v1636_v56, 1000000.0 }
 0x6b3   : > { %v1639_v59 = vmin.f32 %v1637_v57, 1000000.0  ;;  %1640 = vst [vmem:[%s3445_s18] sm:$0xff] %v1638_v58 }
 0x6b5   : > { %1641 = vst [vmem:[%s3445_s18 + $0x8] sm:$0xff] %v1639_v59 }
 0x6b6 PF: > { %p2013_p0 = scmp.ne.s32.totalorder %s2938_s30, 1 }
 0x6b7   : > { %v1648_v60 = vmin.f32 (!%p2013_p0), %v1623_v46, 20.0  ;;  %v1649_v61 = vmin.f32 (!%p2013_p0), %v1626_v50, 20.0  ;;  %vm1646_vm3 = vcmp.gt.f32.partialorder (!%p2013_p0), %v1623_v46, 20.0  ;;  %vm1647_vm4 = vcmp.gt.f32.partialorder (!%p2013_p0), %v1626_v50, 20.0 }
 0x6b8   : > { %1645 = sbr.rel (%p2013_p0) target bundleno = 1756 (0x6dc), region = 132 }
 0x6b9   : > { %v1650_v62 = vmul.f32 (!%p2013_p0), 1.442695, %v1648_v60  ;;  %v1652_v63 = vmul.f32 (!%p2013_p0), 1.442695, %v1649_v61 }
 0x6bb   : > { %2514 = vpow2.f32 (!%p2013_p0), %v1650_v62 }
 0x6bc   : > { %2516 = vpow2.f32 (!%p2013_p0), %v1652_v63 }
 0x6c5   : > { %v2515_v48 = vpop.eup %2514 }
 0x6c6   : > { %v2517_v0 = vpop.eup %2516  ;;  %v1654_v1 = vadd.f32 1.0, %v2515_v48 }
 0x6c7   : > { %v1655_v2 = vadd.f32 1.0, %v2517_v0 }
 0x6c8   : > { %2518 = vlog2.f32 %v1654_v1 }
 0x6c9   : > { %2520 = vlog2.f32 %v1655_v2 }
 0x6d2   : > { %v2519_v3 = vpop.eup %2518 }
 0x6d3   : > { %v2521_v4 = vpop.eup %2520  ;;  %v1657_v5 = vmul.f32 0.6931472, %v2519_v3 }
 0x6d4   : > { %v1659_v6 = vmul.f32 0.6931472, %v2521_v4 }
 0x6d5   : > { %v1660_v7 = vsel %vm1646_vm3, %v1623_v46, %v1657_v5 }
 0x6d6   : > { %v1662_v8 = vmax.f32 %v1660_v7, 0.0001  ;;  %v1661_v9 = vsel %vm1647_vm4, %v1626_v50, %v1659_v6 }
 0x6d7   : > { %v1663_v10 = vmax.f32 %v1661_v9, 0.0001 }
 0x6d8   : > { %v1664_v11 = vmin.f32 %v1662_v8, 10000.0 }
 0x6d9   : > { %v1665_v12 = vmin.f32 %v1663_v10, 10000.0 }
 0x6da   : > { %1666 = vst [vmem:[%s3445_s18] sm:$0xff] %v1664_v11 }
 0x6db   : > { %1667 = vst [vmem:[%s3445_s18 + $0x8] sm:$0xff] %v1665_v12 }
 0x6dc PF: > { %p2014_p5 = scmp.ne.s32.totalorder %s2938_s30, 2 }
 0x6dd   : > { %v1672_v13 = vsub.f32 (!%p2014_p5), 0.0, %v1623_v46  ;;  %v1673_v14 = vsub.f32 (!%p2014_p5), 0.0, %v1626_v50 }
 0x6de   : > { %1671 = sbr.rel (%p2014_p5) target bundleno = 1787 (0x6fb), region = 136 }
 0x6df   : > { %v1674_v15 = vmul.f32 (!%p2014_p5), 1.442695, %v1672_v13  ;;  %v1676_v16 = vmul.f32 (!%p2014_p5), 1.442695, %v1673_v14 }
 0x6e1   : > { %2522 = vpow2.f32 (!%p2014_p5), %v1674_v15 }
 0x6e2   : > { %2524 = vpow2.f32 (!%p2014_p5), %v1676_v16 }
 0x6eb   : > { %v2523_v17 = vpop.eup %2522 }
 0x6ec   : > { %v2525_v18 = vpop.eup %2524  ;;  %v1678_v19 = vadd.f32 1.0, %v2523_v17 }
 0x6ed   : > { %v1679_v20 = vadd.f32 1.0, %v2525_v18 }
 0x6ee   : > { %2526 = vrcp.f32 %v1678_v19 }
 0x6ef   : > { %2528 = vrcp.f32 %v1679_v20 }
 0x6f8   : > { %v2527_v21 = vpop.eup %2526 }
 0x6f9   : > { %v2529_v22 = vpop.eup %2528  ;;  %1682 = vst [vmem:[%s3445_s18] sm:$0xff] %v2527_v21 }
 0x6fa   : > { %1683 = vst [vmem:[%s3445_s18 + $0x8] sm:$0xff] %v2529_v22 }
 0x6fb PF: > { %s2966_s9 = smov [#allocation19]   ;;  %p3714_p12 = scmp.eq.s32.totalorder %s3098_s1, 2 }
 0x6fc   : > { %s1698_s4 = sshll.u32 %s2966_s9, 4  ;;  %s1699_s4 = int_to_ptr.vmem [resolvable:$true] %s1698_s4 }
 0x6fd   : > { %s2784_s11 = scalar_lea.vmem %s1699_s4, 256  ;;  %p2791_p6 = scmp.lt.s32.totalorder %s1699_s4, %s1699_s4 }
 0x6fe   : > { %p2785_p1 = scmp.ne.s32.totalorder %s1699_s4, %s2784_s11  ;;  %p2792_p10 = scmp.lt.s32.totalorder %s2784_s11, %s2784_s11 }
 0x700   : > { %p2786_p4 = pnand %p2785_p1, %p3714_p12  ;;  %p2793_p9 = por %p2792_p10, %p2791_p6 }
 0x702   : > { %p2787_p8 = pneg %p2786_p4 }
 0x704   : > { %p2794_p7 = pnand %p2793_p9, %p2787_p8 }
 0x706   : > { %2797 = shalt.err (!%p2794_p7)
}
 0x707   : > { %s3715_s20 = sld [smem:[#allocation45_spill]]  ;;  %p3716_p11 = pmov %p3714_p12 }
 0x70d   : > { %s2798_s15 = scalar_lea.hbm %s3715_s20, 256 }
 0x70e   : > { %p2799_p3 = scmp.ne.s32.totalorder %s3715_s20, %s2798_s15  ;;  %p2804_p0 = scmp.lt.u32.totalorder %s2798_s15, %s3715_s20 }
 0x710   : > { %p2800_p13 = pnand %p2799_p3, %p3716_p11 }
 0x712   : > { %p2801_p2 = pneg %p2800_p13 }
 0x714   : > { %p2806_p5 = pnand %p2804_p0, %p2801_p2 }
 0x716   : > { %2809 = shalt.err (!%p2806_p5)
}
 0x717   : > { %s3658_s24 = smov 128   ;;  %s2968_s16 = smov 8  }
 0x718   : > { %p3717_p1 = pmov %p3716_p11  ;;  %s2969_s8 = smov [#allocation20]  }
 0x719   : > { %s1714_s5 = sshll.u32 %s2969_s8, 4  ;;  %s2018_s23 = sshll.u32 %s2938_s30, 7  ;;  %s1715_s5 = int_to_ptr.vmem [resolvable:$true] %s1714_s5 }
 0x71a   : > { %2320 = dma.vmem_to_hbm [thread:$0]  (%p3717_p1), %s1699_s4, 256, %s3715_s20, [#allocation6], %s3658_s24, %s3658_s24, %s2968_s16  }
 0x71b   : > { %s3718_s22 = sld [smem:[#allocation47_spill]]  ;;  %s2810_s6 = scalar_lea.vmem %s1715_s5, 256 }
 0x71c   : > { %p2811_p12 = scmp.ne.s32.totalorder %s1715_s5, %s2810_s6  ;;  %p3719_p4 = pmov %p3717_p1 }
 0x71d   : > { %p2817_p10 = scmp.lt.s32.totalorder %s1715_s5, %s1715_s5  ;;  %p2818_p9 = scmp.lt.s32.totalorder %s2810_s6, %s2810_s6 }
 0x71e   : > { %p2812_p8 = pnand %p2811_p12, %p3719_p4 }
 0x71f   : > { %p2819_p7 = por %p2818_p9, %p2817_p10 }
 0x720   : > { %p2813_p6 = pneg %p2812_p8 }
 0x721   : > { %s3534_s3 = scalar_lea.hbm %s3718_s22, %s2018_s23 }
 0x722   : > { %p2820_p3 = pnand %p2819_p7, %p2813_p6 }
 0x724   : > { %2823 = shalt.err (!%p2820_p3)
}
 0x725   : > { %s3720_s11 = sld [smem:[#allocation46_spill]]  ;;  %p3721_p13 = pmov %p3717_p1 }
 0x72b   : > { %s2824_s30 = scalar_lea.hbm %s3720_s11, 256 }
 0x72c   : > { %p2825_p11 = scmp.ne.s32.totalorder %s3720_s11, %s2824_s30  ;;  %p2830_p5 = scmp.lt.u32.totalorder %s2824_s30, %s3720_s11 }
 0x72e   : > { %p2826_p2 = pnand %p2825_p11, %p3721_p13 }
 0x730   : > { %p2827_p0 = pneg %p2826_p2 }
 0x732   : > { %p2832_p1 = pnand %p2830_p5, %p2827_p0 }
 0x734   : > { %2835 = shalt.err (!%p2832_p1)
}
 0x735   : > { %p3722_p12 = pmov %p3719_p4  ;;  %s3723_s6 = smov 128  }
 0x736   : > { %s1732_s24 = sshll.u32 %s3445_s18, 4  ;;  %s3724_s9 = sand.u32 1, %s3098_s1   ;;  %s3558_s24 = int_to_ptr.vmem [resolvable:$true] %s1732_s24 }
 0x737   : > { %2322 = dma.vmem_to_hbm [thread:$0]  (%p3722_p12), %s1715_s5, 256, %s3720_s11, [#allocation21], %s3723_s6, %s3723_s6, %s2968_s16  }
 0x738   : > { %s3562_s30 = scalar_lea.sflag [#allocation6], %s3724_s9  ;;  %s2836_s8 = scalar_lea.vmem %s3558_s24, 256 }
 0x739   : > { %p2837_p4 = scmp.ne.s32.totalorder %s3558_s24, %s2836_s8  ;;  %p3725_p8 = scmp.ne.s32.totalorder %s3692_s17, 0 }
 0x73a   : > { %s2970_s23 = smov [#allocation22]  }
 0x73b   : > { %p2838_p6 = pnand %p2837_p4, %p3725_p8  ;;  %s2840_s15 = sshll.u32 %s2970_s23, 4  ;;  %s2841_s15 = int_to_ptr.vmem [resolvable:$false] %s2840_s15 }
 0x73c   : > { %s2842_s7 = scalar_lea.vmem %s2841_s15, 512  ;;  %p2843_p9 = scmp.lt.s32.totalorder %s3558_s24, %s2841_s15 }
 0x73d   : > { %p2839_p10 = pneg %p2838_p6  ;;  %p2844_p7 = scmp.lt.s32.totalorder %s2842_s7, %s2836_s8 }
 0x73f   : > { %p2845_p3 = por %p2844_p7, %p2843_p9 }
 0x741   : > { %p2846_p11 = pnand %p2845_p3, %p2839_p10 }
 0x743   : > { %2849 = shalt.err (!%p2846_p11)
}
 0x744   : > { %s2850_s18 = scalar_lea.hbm %s3534_s3, 256  ;;  %s2854_s9 = scalar_lea.hbm %s3718_s22, 768 }
 0x745   : > { %p2851_p13 = scmp.ne.s32.totalorder %s3534_s3, %s2850_s18  ;;  %p2855_p5 = scmp.lt.u32.totalorder %s3534_s3, %s3718_s22 }
 0x746   : > { %p2856_p1 = scmp.lt.u32.totalorder %s2854_s9, %s2850_s18  ;;  %p2858_p4 = scmp.lt.u32.totalorder %s2850_s18, %s3534_s3 }
 0x747   : > { %p2852_p2 = pnand %p2851_p13, %p3725_p8 }
 0x748   : > { %p2857_p12 = por %p2856_p1, %p2855_p5 }
 0x749   : > { %p2853_p0 = pneg %p2852_p2 }
 0x74a   : > { %p2859_p6 = por %p2858_p4, %p2857_p12 }
 0x74c   : > { %p2860_p10 = pnand %p2859_p6, %p2853_p0 }
 0x74e   : > { %2863 = shalt.err (!%p2860_p10)
}
 0x74f   : > { %s2971_s8 = smov 384   ;;  %p3726_p9 = scmp.eq.s32.totalorder %s3098_s1, 2 }
 0x750   : > { %2323 = dma.vmem_to_hbm [thread:$0]  (%p3725_p8), %s3558_s24, 256, %s3534_s3, %s3562_s30, %s3723_s6, %s2971_s8, %s2968_s16  }
 0x751   : > { %2913 = dma.done.wait (%p3726_p9), [#allocation6], 256   ;;  %p3727_p7 = pmov %p3726_p9 }
 0x753   : > { %2915 = vsyncadd (%p3727_p7), [#allocation6], 4294967040  ;;  %p3728_p3 = pmov %p3727_p7 }
 0x755   : > { %2917 = dma.done.wait (%p3728_p3), [#allocation21], 256   ;;  %p3729_p11 = pmov %p3728_p3 }
 0x757   : > { %2919 = vsyncadd (%p3729_p11), [#allocation21], 4294967040 }
 0x758 PF: > { %p2383_p13 = scmp.ge.s32.totalorder %s2946_s19, 2  ;;  %s3730_s17 = sadd.s32 4294967294, %s2946_s19  }
 0x759   : > { %s1755_s7 = sand.u32 1, %s3730_s17   ;;  %p3731_p2 = scmp.ne.s32.totalorder %s3693_s27, 0 }
 0x75a   : > { %s1756_s16 = scalar_lea.sflag [#allocation6], %s1755_s7 }
 0x75b   : > { %p2359_p8 = pnand %p2383_p13, %p3731_p2 }
 0x75d   : > { %2921 = dma.done.wait (!%p2359_p8), %s1756_s16, 256  }
 0x75e   : > { %2923 = vsyncadd (!%p2359_p8), %s1756_s16, 4294967040  ;;  %s38_s19 = sadd.s32 1, %s2946_s19   ;;  %s3732_s27 = smov %s2930_s28 }
 0x75f   : > { %p35_p0 = scmp.ge.s32.totalorder %s38_s19, 5   ;;  %s3733_s28 = smov %s2934_s29 }
 0x760   : > { %s3734_s29 = smov %s3352_s13  ;;  %s3735_s30 = smov %s2942_s0 }
 0x761   : > { %s3736_s0 = smov %s3738_s2  ;;  %37 = sbr.rel (!%p35_p0) target bundleno = 27 (0x1b), region = 200 }
 0x768   :  { %1761 = vsyncpa [#allocation5], 1 }
 0x769   :  { %1763 = vsyncpa [#allocation5 + $0x1], 1 }
 0x76a   :  { %1764 = vsyncpa [#allocation8], 1 }
 0x76b   :  { %1765 = vsyncpa [#allocation11], 1 }
 0x76c   :  { %1766 = vsyncpa [#allocation14], 1 }
 0x76d   :  { %1767 = vsyncpa [#allocation17], 1 }
 0x76e   :  { %1769 = vsyncpa [#allocation17 + $0x1], 1 }
 0x76f   :  { %1770 = vsyncpa [#allocation6], 1 }
 0x770   :  { %1772 = vsyncpa [#allocation6 + $0x1], 1 }
 0x771   :  { %1773 = vsyncpa [#allocation21], 1 }

</bundles_post_ra>
